<compile_context>
chip_gen: v7x
topology: tpu7x:2x2x1
jax: 0.10.0
libtpu: 0.0.40
codegen_flags: <defaults>
</compile_context>

<pallas_src>
import functools

import jax
import jax.numpy as jnp
from jax import lax
from jax.experimental import pallas as pl
from jax.experimental.pallas import tpu as pltpu


# --------------------------------------------------------------------------
# Fused kernel: one grid step == one batch element.
# --------------------------------------------------------------------------
def _cross_attn_kernel(
    q_ref,      # (N, dim)
    kv_ref,     # (NK, dim)     (this is `v` in the PyTorch forward; k = v)
    wq_ref,     # (dim, C)
    wkv_ref,    # (dim, 2C)     [wk^T | wv^T] concatenated along output dim
    wp_ref,     # (C, C)
    bp_ref,     # (1, C)
    o_ref,      # (N, C)        output
    w_ref,      # (H, N, NK)    attention weights output
    *,
    num_heads,
    head_dim,
    scale,
):
    C = num_heads * head_dim

    # ---- projections (MXU), f32 accumulation ----
    q_p = jnp.dot(q_ref[...], wq_ref[...], preferred_element_type=jnp.float32)    # (N, C)
    kv_p = jnp.dot(kv_ref[...], wkv_ref[...], preferred_element_type=jnp.float32)  # (NK, 2C)
    k_p = kv_p[:, :C]
    v_p = kv_p[:, C:]

    # ---- per-head scaled dot-product attention (statically unrolled) ----
    ctx_heads = []
    for h in range(num_heads):
        lo = h * head_dim
        hi = lo + head_dim
        q_h = q_p[:, lo:hi]     # (N, hd)
        k_h = k_p[:, lo:hi]     # (NK, hd)
        v_h = v_p[:, lo:hi]     # (NK, hd)

        # scores = q @ k^T * scale, contracting head_dim directly (no transpose)
        s = lax.dot_general(
            q_h, k_h,
            dimension_numbers=(((1,), (1,)), ((), ())),
            preferred_element_type=jnp.float32,
        ) * scale                                             # (N, NK)

        # softmax over keys (max-subtracted, f32)
        m = jnp.max(s, axis=-1, keepdims=True)
        e = jnp.exp(s - m)
        p = e * pl.reciprocal(jnp.sum(e, axis=-1, keepdims=True), approx=True)

        # attn_drop has p=0.0 -> identity.
        w_ref[h] = p.astype(w_ref.dtype)                      # weights writeback
        ctx_heads.append(
            jnp.dot(p, v_h, preferred_element_type=jnp.float32)   # (N, hd)
        )

    # ---- merge heads + output projection (+ bias); proj_drop p=0.0 -> identity
    x = jnp.concatenate(ctx_heads, axis=-1)                   # (N, C)
    out = jnp.dot(x, wp_ref[...], preferred_element_type=jnp.float32) + bp_ref[...]
    o_ref[...] = out.astype(o_ref.dtype)


# --------------------------------------------------------------------------
# Parameter prep (done once, outside the hot path)
# --------------------------------------------------------------------------
def prepare_params(params):
    """PyTorch Linear weights are (out, in); pre-transpose and fuse k|v."""
    return {
        "wq_t": params["wq"].T,                                         # (dim, C)
        "wkv_t": jnp.concatenate([params["wk"].T, params["wv"].T], 1),  # (dim, 2C)
        "wp_t": params["wp"].T,                                         # (C, C)
        "bp2d": params["bp"].reshape(1, -1),                            # (1, C)
    }


# --------------------------------------------------------------------------
# Forward (single fused pallas_call, grid over batch)
# --------------------------------------------------------------------------
def cross_attention_forward(prepared, q_in, v_in, *, num_heads, out_dim, qk_scale=None):
    B, N, dim = q_in.shape
    NK = v_in.shape[1]
    C = out_dim
    hd = C // num_heads
    scale = qk_scale if qk_scale is not None else hd ** (-0.5)

    kernel = functools.partial(
        _cross_attn_kernel, num_heads=num_heads, head_dim=hd, scale=scale
    )

    x, weights = pl.pallas_call(
        kernel,
        out_shape=(
            jax.ShapeDtypeStruct((B, N, C), q_in.dtype),
            jax.ShapeDtypeStruct((B, num_heads, N, NK), jnp.float32),
        ),
        grid=(B,),
        in_specs=[
            pl.BlockSpec((None, N, dim), lambda b: (b, 0, 0)),        # q
            pl.BlockSpec((None, NK, dim), lambda b: (b, 0, 0)),       # v (=k)
            pl.BlockSpec((dim, C), lambda b: (0, 0)),                 # wq^T
            pl.BlockSpec((dim, 2 * C), lambda b: (0, 0)),             # [wk^T|wv^T]
            pl.BlockSpec((C, C), lambda b: (0, 0)),                   # wp^T
            pl.BlockSpec((1, C), lambda b: (0, 0)),                   # bias
        ],
        out_specs=(
            pl.BlockSpec((None, N, C), lambda b: (b, 0, 0)),
            pl.BlockSpec((None, num_heads, N, NK), lambda b: (b, 0, 0, 0)),
        ),
        compiler_params=pltpu.CompilerParams(
            dimension_semantics=("parallel",),   # shards batch across TCs on v7x
        ),
    )(q_in, v_in, prepared["wq_t"], prepared["wkv_t"], prepared["wp_t"], prepared["bp2d"])

    # TODO(synk): at production N/NK (thousands), switch to flash-style online-
    # softmax tiling over NK instead of keeping the full score matrix resident.
    return x, weights


# --------------------------------------------------------------------------
# Pure-JAX reference (mirrors the PyTorch forward) for a sanity check
# --------------------------------------------------------------------------
def cross_attention_reference(params, q_in, v_in, *, num_heads, out_dim):
    B, N, dim = q_in.shape
    NK = v_in.shape[1]
    C = out_dim
    hd = C // num_heads
    scale = hd ** (-0.5)
    q_p = q_in @ params["wq"].T
    k_p = v_in @ params["wk"].T
    v_p = v_in @ params["wv"].T
    q_h = q_p.reshape(B, N, num_heads, hd).transpose(0, 2, 1, 3)
    k_h = k_p.reshape(B, NK, num_heads, hd).transpose(0, 2, 1, 3)
    v_h = v_p.reshape(B, NK, num_heads, hd).transpose(0, 2, 1, 3)
    attn = jnp.einsum("bhnd,bhkd->bhnk", q_h, k_h) * scale
    attn = jax.nn.softmax(attn, axis=-1)
    x = jnp.einsum("bhnk,bhkd->bhnd", attn, v_h).transpose(0, 2, 1, 3).reshape(B, N, C)
    x = x @ params["wp"].T + params["bp"]
    return x, attn


# --------------------------------------------------------------------------
# Main
# --------------------------------------------------------------------------
if __name__ == "__main__":
    # Small shapes consistent with the module.
    B, N, NK = 2, 8, 8
    dim, out_dim, num_heads = 32, 32, 8

    key = jax.random.PRNGKey(0)
    k0, k1, k2, k3, k4, k5, k6 = jax.random.split(key, 7)

    # Deterministic parameter init (PyTorch Linear weight shapes: (out, in)).
    params = {
        "wq": jax.random.normal(k0, (out_dim, dim), jnp.float32) * 0.05,
        "wk": jax.random.normal(k1, (out_dim, dim), jnp.float32) * 0.05,
        "wv": jax.random.normal(k2, (out_dim, dim), jnp.float32) * 0.05,
        "wp": jax.random.normal(k3, (out_dim, out_dim), jnp.float32) * 0.05,
        "bp": jax.random.normal(k4, (out_dim,), jnp.float32) * 0.05,
    }
    prepared = prepare_params(params)

    q_in = jax.random.normal(k5, (B, N, dim), jnp.float32)
    v_in = jax.random.normal(k6, (B, NK, dim), jnp.float32)

    x, weights = cross_attention_forward(
        prepared, q_in, v_in, num_heads=num_heads, out_dim=out_dim
    )
    x = jax.block_until_ready(x)
    weights = jax.block_until_ready(weights)

    x_ref, w_ref = cross_attention_reference(
        params, q_in, v_in, num_heads=num_heads, out_dim=out_dim
    )

    assert x.shape == (B, N, out_dim)
    assert weights.shape == (B, num_heads, N, NK)
    # Tolerances account for pl.reciprocal(approx=True) in the softmax denom.
    assert jnp.allclose(x, x_ref, atol=5e-3, rtol=5e-3)
    assert jnp.allclose(weights, w_ref, atol=5e-3, rtol=5e-3)

    print("KERNEL_OK")
</pallas_src>

<mosaic_0001>
module attributes {stable_mosaic.version = 11 : i64} {
  func.func @_cross_attn_kernel(%arg0: i32, %arg1: memref<1x8x32xf32, #tpu.memory_space<vmem>>, %arg2: memref<1x8x32xf32, #tpu.memory_space<vmem>>, %arg3: memref<32x32xf32, #tpu.memory_space<vmem>>, %arg4: memref<32x64xf32, #tpu.memory_space<vmem>>, %arg5: memref<32x32xf32, #tpu.memory_space<vmem>>, %arg6: memref<1x32xf32, #tpu.memory_space<vmem>>, %arg7: memref<1x8x32xf32, #tpu.memory_space<vmem>>, %arg8: memref<1x8x8x8xf32, #tpu.memory_space<vmem>>) attributes {dimension_semantics = [#tpu.dimension_semantics<parallel>], iteration_bounds = array<i64: 2>, scalar_prefetch = 0 : i64, scratch_operands = 0 : i64, tpu.core_type = #tpu.core_type<tc>, window_params = [{transform_indices = @transform_0, window_bounds = array<i64: 1, 8, 32>}, {transform_indices = @transform_1, window_bounds = array<i64: 1, 8, 32>}, {pipeline_mode = #tpu.pipeline_mode<synchronous>, transform_indices = @transform_2, window_bounds = array<i64: 32, 32>}, {pipeline_mode = #tpu.pipeline_mode<synchronous>, transform_indices = @transform_3, window_bounds = array<i64: 32, 64>}, {pipeline_mode = #tpu.pipeline_mode<synchronous>, transform_indices = @transform_4, window_bounds = array<i64: 32, 32>}, {pipeline_mode = #tpu.pipeline_mode<synchronous>, transform_indices = @transform_5, window_bounds = array<i64: 1, 32>}, {transform_indices = @transform_6, window_bounds = array<i64: 1, 8, 32>}, {transform_indices = @transform_7, window_bounds = array<i64: 1, 8, 8, 8>}]} {
    %c0 = arith.constant 0 : index
    %c0_0 = arith.constant 0 : index
    %c0_1 = arith.constant 0 : index
    %0 = vector.load %arg1[%c0, %c0_0, %c0_1] : memref<1x8x32xf32, #tpu.memory_space<vmem>>, vector<1x8x32xf32>
    %1 = vector.shape_cast %0 : vector<1x8x32xf32> to vector<8x32xf32>
    %c0_2 = arith.constant 0 : index
    %c0_3 = arith.constant 0 : index
    %2 = vector.load %arg3[%c0_2, %c0_3] : memref<32x32xf32, #tpu.memory_space<vmem>>, vector<32x32xf32>
    %cst = arith.constant dense<0.000000e+00> : vector<8x32xf32>
    %3 = tpu.matmul %1, %2, %cst {dimension_numbers = #tpu.dot_dimension_numbers<[1], [0], [0], [1], [0, 0, 1, 1], [], []>} : vector<8x32xf32>, vector<32x32xf32>, vector<8x32xf32> -> vector<8x32xf32>
    %c0_4 = arith.constant 0 : index
    %c0_5 = arith.constant 0 : index
    %c0_6 = arith.constant 0 : index
    %4 = vector.load %arg2[%c0_4, %c0_5, %c0_6] : memref<1x8x32xf32, #tpu.memory_space<vmem>>, vector<1x8x32xf32>
    %5 = vector.shape_cast %4 : vector<1x8x32xf32> to vector<8x32xf32>
    %c0_7 = arith.constant 0 : index
    %c0_8 = arith.constant 0 : index
    %6 = vector.load %arg4[%c0_7, %c0_8] : memref<32x64xf32, #tpu.memory_space<vmem>>, vector<32x64xf32>
    %cst_9 = arith.constant dense<0.000000e+00> : vector<8x64xf32>
    %7 = tpu.matmul %5, %6, %cst_9 {dimension_numbers = #tpu.dot_dimension_numbers<[1], [0], [0], [1], [0, 0, 1, 1], [], []>} : vector<8x32xf32>, vector<32x64xf32>, vector<8x64xf32> -> vector<8x64xf32>
    %8 = vector.extract_strided_slice %7 {offsets = [0, 0], sizes = [8, 32], strides = [1, 1]} : vector<8x64xf32> to vector<8x32xf32>
    %9 = vector.extract_strided_slice %7 {offsets = [0, 32], sizes = [8, 32], strides = [1, 1]} : vector<8x64xf32> to vector<8x32xf32>
    %10 = vector.extract_strided_slice %3 {offsets = [0, 0], sizes = [8, 4], strides = [1, 1]} : vector<8x32xf32> to vector<8x4xf32>
    %11 = vector.extract_strided_slice %8 {offsets = [0, 0], sizes = [8, 4], strides = [1, 1]} : vector<8x32xf32> to vector<8x4xf32>
    %12 = vector.extract_strided_slice %9 {offsets = [0, 0], sizes = [8, 4], strides = [1, 1]} : vector<8x32xf32> to vector<8x4xf32>
    %cst_10 = arith.constant dense<0.000000e+00> : vector<8x8xf32>
    %13 = tpu.matmul %10, %11, %cst_10 {dimension_numbers = #tpu.dot_dimension_numbers<[1], [1], [0], [0], [0, 0, 1, 0], [], []>} : vector<8x4xf32>, vector<8x4xf32>, vector<8x8xf32> -> vector<8x8xf32>
    %cst_11 = arith.constant 5.000000e-01 : f32
    %14 = vector.broadcast %cst_11 : f32 to vector<8x8xf32>
    %15 = arith.mulf %13, %14 : vector<8x8xf32>
    %cst_12 = arith.constant dense<0xFF800000> : vector<8xf32>
    %16 = vector.multi_reduction <maximumf>, %15, %cst_12 [1] : vector<8x8xf32> to vector<8xf32>
    %17 = vector.shape_cast %16 : vector<8xf32> to vector<8x1xf32>
    %18 = vector.broadcast %17 : vector<8x1xf32> to vector<8x8xf32>
    %19 = arith.subf %15, %18 : vector<8x8xf32>
    %20 = math.exp %19 : vector<8x8xf32>
    %cst_13 = arith.constant dense<0.000000e+00> : vector<8xf32>
    %21 = vector.multi_reduction <add>, %20, %cst_13 [1] : vector<8x8xf32> to vector<8xf32>
    %22 = vector.shape_cast %21 : vector<8xf32> to vector<8x1xf32>
    %23 = tpu.reciprocal %22 {approx = true} : vector<8x1xf32> -> vector<8x1xf32>
    %24 = vector.broadcast %23 : vector<8x1xf32> to vector<8x8xf32>
    %25 = arith.mulf %20, %24 : vector<8x8xf32>
    %c0_14 = arith.constant 0 : index
    %c0_15 = arith.constant 0 : index
    %c0_16 = arith.constant 0 : index
    %c0_17 = arith.constant 0 : index
    %26 = vector.load %arg8[%c0_14, %c0_15, %c0_16, %c0_17] : memref<1x8x8x8xf32, #tpu.memory_space<vmem>>, vector<1x1x8x8xf32>
    %27 = vector.shape_cast %26 : vector<1x1x8x8xf32> to vector<8x8xf32>
    %28 = vector.shape_cast %25 : vector<8x8xf32> to vector<1x1x8x8xf32>
    tpu.vector_store %arg8[%c0_14, %c0_15, %c0_16, %c0_17], %28 {strides = array<i32>} : memref<1x8x8x8xf32, #tpu.memory_space<vmem>>, vector<1x1x8x8xf32>,
    %cst_18 = arith.constant dense<0.000000e+00> : vector<8x4xf32>
    %29 = tpu.matmul %25, %12, %cst_18 {dimension_numbers = #tpu.dot_dimension_numbers<[1], [0], [0], [1], [0, 0, 1, 1], [], []>} : vector<8x8xf32>, vector<8x4xf32>, vector<8x4xf32> -> vector<8x4xf32>
    %30 = vector.extract_strided_slice %3 {offsets = [0, 4], sizes = [8, 4], strides = [1, 1]} : vector<8x32xf32> to vector<8x4xf32>
    %31 = vector.extract_strided_slice %8 {offsets = [0, 4], sizes = [8, 4], strides = [1, 1]} : vector<8x32xf32> to vector<8x4xf32>
    %32 = vector.extract_strided_slice %9 {offsets = [0, 4], sizes = [8, 4], strides = [1, 1]} : vector<8x32xf32> to vector<8x4xf32>
    %cst_19 = arith.constant dense<0.000000e+00> : vector<8x8xf32>
    %33 = tpu.matmul %30, %31, %cst_19 {dimension_numbers = #tpu.dot_dimension_numbers<[1], [1], [0], [0], [0, 0, 1, 0], [], []>} : vector<8x4xf32>, vector<8x4xf32>, vector<8x8xf32> -> vector<8x8xf32>
    %cst_20 = arith.constant 5.000000e-01 : f32
    %34 = vector.broadcast %cst_20 : f32 to vector<8x8xf32>
    %35 = arith.mulf %33, %34 : vector<8x8xf32>
    %cst_21 = arith.constant dense<0xFF800000> : vector<8xf32>
    %36 = vector.multi_reduction <maximumf>, %35, %cst_21 [1] : vector<8x8xf32> to vector<8xf32>
    %37 = vector.shape_cast %36 : vector<8xf32> to vector<8x1xf32>
    %38 = vector.broadcast %37 : vector<8x1xf32> to vector<8x8xf32>
    %39 = arith.subf %35, %38 : vector<8x8xf32>
    %40 = math.exp %39 : vector<8x8xf32>
    %cst_22 = arith.constant dense<0.000000e+00> : vector<8xf32>
    %41 = vector.multi_reduction <add>, %40, %cst_22 [1] : vector<8x8xf32> to vector<8xf32>
    %42 = vector.shape_cast %41 : vector<8xf32> to vector<8x1xf32>
    %43 = tpu.reciprocal %42 {approx = true} : vector<8x1xf32> -> vector<8x1xf32>
    %44 = vector.broadcast %43 : vector<8x1xf32> to vector<8x8xf32>
    %45 = arith.mulf %40, %44 : vector<8x8xf32>
    %c0_23 = arith.constant 0 : index
    %c1 = arith.constant 1 : index
    %c0_24 = arith.constant 0 : index
    %c0_25 = arith.constant 0 : index
    %46 = vector.load %arg8[%c0_23, %c1, %c0_24, %c0_25] : memref<1x8x8x8xf32, #tpu.memory_space<vmem>>, vector<1x1x8x8xf32>
    %47 = vector.shape_cast %46 : vector<1x1x8x8xf32> to vector<8x8xf32>
    %48 = vector.shape_cast %45 : vector<8x8xf32> to vector<1x1x8x8xf32>
    tpu.vector_store %arg8[%c0_23, %c1, %c0_24, %c0_25], %48 {strides = array<i32>} : memref<1x8x8x8xf32, #tpu.memory_space<vmem>>, vector<1x1x8x8xf32>,
    %cst_26 = arith.constant dense<0.000000e+00> : vector<8x4xf32>
    %49 = tpu.matmul %45, %32, %cst_26 {dimension_numbers = #tpu.dot_dimension_numbers<[1], [0], [0], [1], [0, 0, 1, 1], [], []>} : vector<8x8xf32>, vector<8x4xf32>, vector<8x4xf32> -> vector<8x4xf32>
    %50 = vector.extract_strided_slice %3 {offsets = [0, 8], sizes = [8, 4], strides = [1, 1]} : vector<8x32xf32> to vector<8x4xf32>
    %51 = vector.extract_strided_slice %8 {offsets = [0, 8], sizes = [8, 4], strides = [1, 1]} : vector<8x32xf32> to vector<8x4xf32>
    %52 = vector.extract_strided_slice %9 {offsets = [0, 8], sizes = [8, 4], strides = [1, 1]} : vector<8x32xf32> to vector<8x4xf32>
    %cst_27 = arith.constant dense<0.000000e+00> : vector<8x8xf32>
    %53 = tpu.matmul %50, %51, %cst_27 {dimension_numbers = #tpu.dot_dimension_numbers<[1], [1], [0], [0], [0, 0, 1, 0], [], []>} : vector<8x4xf32>, vector<8x4xf32>, vector<8x8xf32> -> vector<8x8xf32>
    %cst_28 = arith.constant 5.000000e-01 : f32
    %54 = vector.broadcast %cst_28 : f32 to vector<8x8xf32>
    %55 = arith.mulf %53, %54 : vector<8x8xf32>
    %cst_29 = arith.constant dense<0xFF800000> : vector<8xf32>
    %56 = vector.multi_reduction <maximumf>, %55, %cst_29 [1] : vector<8x8xf32> to vector<8xf32>
    %57 = vector.shape_cast %56 : vector<8xf32> to vector<8x1xf32>
    %58 = vector.broadcast %57 : vector<8x1xf32> to vector<8x8xf32>
    %59 = arith.subf %55, %58 : vector<8x8xf32>
    %60 = math.exp %59 : vector<8x8xf32>
    %cst_30 = arith.constant dense<0.000000e+00> : vector<8xf32>
    %61 = vector.multi_reduction <add>, %60, %cst_30 [1] : vector<8x8xf32> to vector<8xf32>
    %62 = vector.shape_cast %61 : vector<8xf32> to vector<8x1xf32>
    %63 = tpu.reciprocal %62 {approx = true} : vector<8x1xf32> -> vector<8x1xf32>
    %64 = vector.broadcast %63 : vector<8x1xf32> to vector<8x8xf32>
    %65 = arith.mulf %60, %64 : vector<8x8xf32>
    %c0_31 = arith.constant 0 : index
    %c2 = arith.constant 2 : index
    %c0_32 = arith.constant 0 : index
    %c0_33 = arith.constant 0 : index
    %66 = vector.load %arg8[%c0_31, %c2, %c0_32, %c0_33] : memref<1x8x8x8xf32, #tpu.memory_space<vmem>>, vector<1x1x8x8xf32>
    %67 = vector.shape_cast %66 : vector<1x1x8x8xf32> to vector<8x8xf32>
    %68 = vector.shape_cast %65 : vector<8x8xf32> to vector<1x1x8x8xf32>
    tpu.vector_store %arg8[%c0_31, %c2, %c0_32, %c0_33], %68 {strides = array<i32>} : memref<1x8x8x8xf32, #tpu.memory_space<vmem>>, vector<1x1x8x8xf32>,
    %cst_34 = arith.constant dense<0.000000e+00> : vector<8x4xf32>
    %69 = tpu.matmul %65, %52, %cst_34 {dimension_numbers = #tpu.dot_dimension_numbers<[1], [0], [0], [1], [0, 0, 1, 1], [], []>} : vector<8x8xf32>, vector<8x4xf32>, vector<8x4xf32> -> vector<8x4xf32>
    %70 = vector.extract_strided_slice %3 {offsets = [0, 12], sizes = [8, 4], strides = [1, 1]} : vector<8x32xf32> to vector<8x4xf32>
    %71 = vector.extract_strided_slice %8 {offsets = [0, 12], sizes = [8, 4], strides = [1, 1]} : vector<8x32xf32> to vector<8x4xf32>
    %72 = vector.extract_strided_slice %9 {offsets = [0, 12], sizes = [8, 4], strides = [1, 1]} : vector<8x32xf32> to vector<8x4xf32>
    %cst_35 = arith.constant dense<0.000000e+00> : vector<8x8xf32>
    %73 = tpu.matmul %70, %71, %cst_35 {dimension_numbers = #tpu.dot_dimension_numbers<[1], [1], [0], [0], [0, 0, 1, 0], [], []>} : vector<8x4xf32>, vector<8x4xf32>, vector<8x8xf32> -> vector<8x8xf32>
    %cst_36 = arith.constant 5.000000e-01 : f32
    %74 = vector.broadcast %cst_36 : f32 to vector<8x8xf32>
    %75 = arith.mulf %73, %74 : vector<8x8xf32>
    %cst_37 = arith.constant dense<0xFF800000> : vector<8xf32>
    %76 = vector.multi_reduction <maximumf>, %75, %cst_37 [1] : vector<8x8xf32> to vector<8xf32>
    %77 = vector.shape_cast %76 : vector<8xf32> to vector<8x1xf32>
    %78 = vector.broadcast %77 : vector<8x1xf32> to vector<8x8xf32>
    %79 = arith.subf %75, %78 : vector<8x8xf32>
    %80 = math.exp %79 : vector<8x8xf32>
    %cst_38 = arith.constant dense<0.000000e+00> : vector<8xf32>
    %81 = vector.multi_reduction <add>, %80, %cst_38 [1] : vector<8x8xf32> to vector<8xf32>
    %82 = vector.shape_cast %81 : vector<8xf32> to vector<8x1xf32>
    %83 = tpu.reciprocal %82 {approx = true} : vector<8x1xf32> -> vector<8x1xf32>
    %84 = vector.broadcast %83 : vector<8x1xf32> to vector<8x8xf32>
    %85 = arith.mulf %80, %84 : vector<8x8xf32>
    %c0_39 = arith.constant 0 : index
    %c3 = arith.constant 3 : index
    %c0_40 = arith.constant 0 : index
    %c0_41 = arith.constant 0 : index
    %86 = vector.load %arg8[%c0_39, %c3, %c0_40, %c0_41] : memref<1x8x8x8xf32, #tpu.memory_space<vmem>>, vector<1x1x8x8xf32>
    %87 = vector.shape_cast %86 : vector<1x1x8x8xf32> to vector<8x8xf32>
    %88 = vector.shape_cast %85 : vector<8x8xf32> to vector<1x1x8x8xf32>
    tpu.vector_store %arg8[%c0_39, %c3, %c0_40, %c0_41], %88 {strides = array<i32>} : memref<1x8x8x8xf32, #tpu.memory_space<vmem>>, vector<1x1x8x8xf32>,
    %cst_42 = arith.constant dense<0.000000e+00> : vector<8x4xf32>
    %89 = tpu.matmul %85, %72, %cst_42 {dimension_numbers = #tpu.dot_dimension_numbers<[1], [0], [0], [1], [0, 0, 1, 1], [], []>} : vector<8x8xf32>, vector<8x4xf32>, vector<8x4xf32> -> vector<8x4xf32>
    %90 = vector.extract_strided_slice %3 {offsets = [0, 16], sizes = [8, 4], strides = [1, 1]} : vector<8x32xf32> to vector<8x4xf32>
    %91 = vector.extract_strided_slice %8 {offsets = [0, 16], sizes = [8, 4], strides = [1, 1]} : vector<8x32xf32> to vector<8x4xf32>
    %92 = vector.extract_strided_slice %9 {offsets = [0, 16], sizes = [8, 4], strides = [1, 1]} : vector<8x32xf32> to vector<8x4xf32>
    %cst_43 = arith.constant dense<0.000000e+00> : vector<8x8xf32>
    %93 = tpu.matmul %90, %91, %cst_43 {dimension_numbers = #tpu.dot_dimension_numbers<[1], [1], [0], [0], [0, 0, 1, 0], [], []>} : vector<8x4xf32>, vector<8x4xf32>, vector<8x8xf32> -> vector<8x8xf32>
    %cst_44 = arith.constant 5.000000e-01 : f32
    %94 = vector.broadcast %cst_44 : f32 to vector<8x8xf32>
    %95 = arith.mulf %93, %94 : vector<8x8xf32>
    %cst_45 = arith.constant dense<0xFF800000> : vector<8xf32>
    %96 = vector.multi_reduction <maximumf>, %95, %cst_45 [1] : vector<8x8xf32> to vector<8xf32>
    %97 = vector.shape_cast %96 : vector<8xf32> to vector<8x1xf32>
    %98 = vector.broadcast %97 : vector<8x1xf32> to vector<8x8xf32>
    %99 = arith.subf %95, %98 : vector<8x8xf32>
    %100 = math.exp %99 : vector<8x8xf32>
    %cst_46 = arith.constant dense<0.000000e+00> : vector<8xf32>
    %101 = vector.multi_reduction <add>, %100, %cst_46 [1] : vector<8x8xf32> to vector<8xf32>
    %102 = vector.shape_cast %101 : vector<8xf32> to vector<8x1xf32>
    %103 = tpu.reciprocal %102 {approx = true} : vector<8x1xf32> -> vector<8x1xf32>
    %104 = vector.broadcast %103 : vector<8x1xf32> to vector<8x8xf32>
    %105 = arith.mulf %100, %104 : vector<8x8xf32>
    %c0_47 = arith.constant 0 : index
    %c4 = arith.constant 4 : index
    %c0_48 = arith.constant 0 : index
    %c0_49 = arith.constant 0 : index
    %106 = vector.load %arg8[%c0_47, %c4, %c0_48, %c0_49] : memref<1x8x8x8xf32, #tpu.memory_space<vmem>>, vector<1x1x8x8xf32>
    %107 = vector.shape_cast %106 : vector<1x1x8x8xf32> to vector<8x8xf32>
    %108 = vector.shape_cast %105 : vector<8x8xf32> to vector<1x1x8x8xf32>
    tpu.vector_store %arg8[%c0_47, %c4, %c0_48, %c0_49], %108 {strides = array<i32>} : memref<1x8x8x8xf32, #tpu.memory_space<vmem>>, vector<1x1x8x8xf32>,
    %cst_50 = arith.constant dense<0.000000e+00> : vector<8x4xf32>
    %109 = tpu.matmul %105, %92, %cst_50 {dimension_numbers = #tpu.dot_dimension_numbers<[1], [0], [0], [1], [0, 0, 1, 1], [], []>} : vector<8x8xf32>, vector<8x4xf32>, vector<8x4xf32> -> vector<8x4xf32>
    %110 = vector.extract_strided_slice %3 {offsets = [0, 20], sizes = [8, 4], strides = [1, 1]} : vector<8x32xf32> to vector<8x4xf32>
    %111 = vector.extract_strided_slice %8 {offsets = [0, 20], sizes = [8, 4], strides = [1, 1]} : vector<8x32xf32> to vector<8x4xf32>
    %112 = vector.extract_strided_slice %9 {offsets = [0, 20], sizes = [8, 4], strides = [1, 1]} : vector<8x32xf32> to vector<8x4xf32>
    %cst_51 = arith.constant dense<0.000000e+00> : vector<8x8xf32>
    %113 = tpu.matmul %110, %111, %cst_51 {dimension_numbers = #tpu.dot_dimension_numbers<[1], [1], [0], [0], [0, 0, 1, 0], [], []>} : vector<8x4xf32>, vector<8x4xf32>, vector<8x8xf32> -> vector<8x8xf32>
    %cst_52 = arith.constant 5.000000e-01 : f32
    %114 = vector.broadcast %cst_52 : f32 to vector<8x8xf32>
    %115 = arith.mulf %113, %114 : vector<8x8xf32>
    %cst_53 = arith.constant dense<0xFF800000> : vector<8xf32>
    %116 = vector.multi_reduction <maximumf>, %115, %cst_53 [1] : vector<8x8xf32> to vector<8xf32>
    %117 = vector.shape_cast %116 : vector<8xf32> to vector<8x1xf32>
    %118 = vector.broadcast %117 : vector<8x1xf32> to vector<8x8xf32>
    %119 = arith.subf %115, %118 : vector<8x8xf32>
    %120 = math.exp %119 : vector<8x8xf32>
    %cst_54 = arith.constant dense<0.000000e+00> : vector<8xf32>
    %121 = vector.multi_reduction <add>, %120, %cst_54 [1] : vector<8x8xf32> to vector<8xf32>
    %122 = vector.shape_cast %121 : vector<8xf32> to vector<8x1xf32>
    %123 = tpu.reciprocal %122 {approx = true} : vector<8x1xf32> -> vector<8x1xf32>
    %124 = vector.broadcast %123 : vector<8x1xf32> to vector<8x8xf32>
    %125 = arith.mulf %120, %124 : vector<8x8xf32>
    %c0_55 = arith.constant 0 : index
    %c5 = arith.constant 5 : index
    %c0_56 = arith.constant 0 : index
    %c0_57 = arith.constant 0 : index
    %126 = vector.load %arg8[%c0_55, %c5, %c0_56, %c0_57] : memref<1x8x8x8xf32, #tpu.memory_space<vmem>>, vector<1x1x8x8xf32>
    %127 = vector.shape_cast %126 : vector<1x1x8x8xf32> to vector<8x8xf32>
    %128 = vector.shape_cast %125 : vector<8x8xf32> to vector<1x1x8x8xf32>
    tpu.vector_store %arg8[%c0_55, %c5, %c0_56, %c0_57], %128 {strides = array<i32>} : memref<1x8x8x8xf32, #tpu.memory_space<vmem>>, vector<1x1x8x8xf32>,
    %cst_58 = arith.constant dense<0.000000e+00> : vector<8x4xf32>
    %129 = tpu.matmul %125, %112, %cst_58 {dimension_numbers = #tpu.dot_dimension_numbers<[1], [0], [0], [1], [0, 0, 1, 1], [], []>} : vector<8x8xf32>, vector<8x4xf32>, vector<8x4xf32> -> vector<8x4xf32>
    %130 = vector.extract_strided_slice %3 {offsets = [0, 24], sizes = [8, 4], strides = [1, 1]} : vector<8x32xf32> to vector<8x4xf32>
    %131 = vector.extract_strided_slice %8 {offsets = [0, 24], sizes = [8, 4], strides = [1, 1]} : vector<8x32xf32> to vector<8x4xf32>
    %132 = vector.extract_strided_slice %9 {offsets = [0, 24], sizes = [8, 4], strides = [1, 1]} : vector<8x32xf32> to vector<8x4xf32>
    %cst_59 = arith.constant dense<0.000000e+00> : vector<8x8xf32>
    %133 = tpu.matmul %130, %131, %cst_59 {dimension_numbers = #tpu.dot_dimension_numbers<[1], [1], [0], [0], [0, 0, 1, 0], [], []>} : vector<8x4xf32>, vector<8x4xf32>, vector<8x8xf32> -> vector<8x8xf32>
    %cst_60 = arith.constant 5.000000e-01 : f32
    %134 = vector.broadcast %cst_60 : f32 to vector<8x8xf32>
    %135 = arith.mulf %133, %134 : vector<8x8xf32>
    %cst_61 = arith.constant dense<0xFF800000> : vector<8xf32>
    %136 = vector.multi_reduction <maximumf>, %135, %cst_61 [1] : vector<8x8xf32> to vector<8xf32>
    %137 = vector.shape_cast %136 : vector<8xf32> to vector<8x1xf32>
    %138 = vector.broadcast %137 : vector<8x1xf32> to vector<8x8xf32>
    %139 = arith.subf %135, %138 : vector<8x8xf32>
    %140 = math.exp %139 : vector<8x8xf32>
    %cst_62 = arith.constant dense<0.000000e+00> : vector<8xf32>
    %141 = vector.multi_reduction <add>, %140, %cst_62 [1] : vector<8x8xf32> to vector<8xf32>
    %142 = vector.shape_cast %141 : vector<8xf32> to vector<8x1xf32>
    %143 = tpu.reciprocal %142 {approx = true} : vector<8x1xf32> -> vector<8x1xf32>
    %144 = vector.broadcast %143 : vector<8x1xf32> to vector<8x8xf32>
    %145 = arith.mulf %140, %144 : vector<8x8xf32>
    %c0_63 = arith.constant 0 : index
    %c6 = arith.constant 6 : index
    %c0_64 = arith.constant 0 : index
    %c0_65 = arith.constant 0 : index
    %146 = vector.load %arg8[%c0_63, %c6, %c0_64, %c0_65] : memref<1x8x8x8xf32, #tpu.memory_space<vmem>>, vector<1x1x8x8xf32>
    %147 = vector.shape_cast %146 : vector<1x1x8x8xf32> to vector<8x8xf32>
    %148 = vector.shape_cast %145 : vector<8x8xf32> to vector<1x1x8x8xf32>
    tpu.vector_store %arg8[%c0_63, %c6, %c0_64, %c0_65], %148 {strides = array<i32>} : memref<1x8x8x8xf32, #tpu.memory_space<vmem>>, vector<1x1x8x8xf32>,
    %cst_66 = arith.constant dense<0.000000e+00> : vector<8x4xf32>
    %149 = tpu.matmul %145, %132, %cst_66 {dimension_numbers = #tpu.dot_dimension_numbers<[1], [0], [0], [1], [0, 0, 1, 1], [], []>} : vector<8x8xf32>, vector<8x4xf32>, vector<8x4xf32> -> vector<8x4xf32>
    %150 = vector.extract_strided_slice %3 {offsets = [0, 28], sizes = [8, 4], strides = [1, 1]} : vector<8x32xf32> to vector<8x4xf32>
    %151 = vector.extract_strided_slice %8 {offsets = [0, 28], sizes = [8, 4], strides = [1, 1]} : vector<8x32xf32> to vector<8x4xf32>
    %152 = vector.extract_strided_slice %9 {offsets = [0, 28], sizes = [8, 4], strides = [1, 1]} : vector<8x32xf32> to vector<8x4xf32>
    %cst_67 = arith.constant dense<0.000000e+00> : vector<8x8xf32>
    %153 = tpu.matmul %150, %151, %cst_67 {dimension_numbers = #tpu.dot_dimension_numbers<[1], [1], [0], [0], [0, 0, 1, 0], [], []>} : vector<8x4xf32>, vector<8x4xf32>, vector<8x8xf32> -> vector<8x8xf32>
    %cst_68 = arith.constant 5.000000e-01 : f32
    %154 = vector.broadcast %cst_68 : f32 to vector<8x8xf32>
    %155 = arith.mulf %153, %154 : vector<8x8xf32>
    %cst_69 = arith.constant dense<0xFF800000> : vector<8xf32>
    %156 = vector.multi_reduction <maximumf>, %155, %cst_69 [1] : vector<8x8xf32> to vector<8xf32>
    %157 = vector.shape_cast %156 : vector<8xf32> to vector<8x1xf32>
    %158 = vector.broadcast %157 : vector<8x1xf32> to vector<8x8xf32>
    %159 = arith.subf %155, %158 : vector<8x8xf32>
    %160 = math.exp %159 : vector<8x8xf32>
    %cst_70 = arith.constant dense<0.000000e+00> : vector<8xf32>
    %161 = vector.multi_reduction <add>, %160, %cst_70 [1] : vector<8x8xf32> to vector<8xf32>
    %162 = vector.shape_cast %161 : vector<8xf32> to vector<8x1xf32>
    %163 = tpu.reciprocal %162 {approx = true} : vector<8x1xf32> -> vector<8x1xf32>
    %164 = vector.broadcast %163 : vector<8x1xf32> to vector<8x8xf32>
    %165 = arith.mulf %160, %164 : vector<8x8xf32>
    %c0_71 = arith.constant 0 : index
    %c7 = arith.constant 7 : index
    %c0_72 = arith.constant 0 : index
    %c0_73 = arith.constant 0 : index
    %166 = vector.load %arg8[%c0_71, %c7, %c0_72, %c0_73] : memref<1x8x8x8xf32, #tpu.memory_space<vmem>>, vector<1x1x8x8xf32>
    %167 = vector.shape_cast %166 : vector<1x1x8x8xf32> to vector<8x8xf32>
    %168 = vector.shape_cast %165 : vector<8x8xf32> to vector<1x1x8x8xf32>
    tpu.vector_store %arg8[%c0_71, %c7, %c0_72, %c0_73], %168 {strides = array<i32>} : memref<1x8x8x8xf32, #tpu.memory_space<vmem>>, vector<1x1x8x8xf32>,
    %cst_74 = arith.constant dense<0.000000e+00> : vector<8x4xf32>
    %169 = tpu.matmul %165, %152, %cst_74 {dimension_numbers = #tpu.dot_dimension_numbers<[1], [0], [0], [1], [0, 0, 1, 1], [], []>} : vector<8x8xf32>, vector<8x4xf32>, vector<8x4xf32> -> vector<8x4xf32>
    %170 = tpu.concatenate %29, %49, %69, %89, %109, %129, %149, %169 in 1 : vector<8x4xf32>, vector<8x4xf32>, vector<8x4xf32>, vector<8x4xf32>, vector<8x4xf32>, vector<8x4xf32>, vector<8x4xf32>, vector<8x4xf32> -> vector<8x32xf32>
    %c0_75 = arith.constant 0 : index
    %c0_76 = arith.constant 0 : index
    %171 = vector.load %arg5[%c0_75, %c0_76] : memref<32x32xf32, #tpu.memory_space<vmem>>, vector<32x32xf32>
    %cst_77 = arith.constant dense<0.000000e+00> : vector<8x32xf32>
    %172 = tpu.matmul %170, %171, %cst_77 {dimension_numbers = #tpu.dot_dimension_numbers<[1], [0], [0], [1], [0, 0, 1, 1], [], []>} : vector<8x32xf32>, vector<32x32xf32>, vector<8x32xf32> -> vector<8x32xf32>
    %c0_78 = arith.constant 0 : index
    %c0_79 = arith.constant 0 : index
    %173 = vector.load %arg6[%c0_78, %c0_79] : memref<1x32xf32, #tpu.memory_space<vmem>>, vector<1x32xf32>
    %174 = vector.broadcast %173 : vector<1x32xf32> to vector<8x32xf32>
    %175 = arith.addf %172, %174 : vector<8x32xf32>
    %c0_80 = arith.constant 0 : index
    %c0_81 = arith.constant 0 : index
    %c0_82 = arith.constant 0 : index
    %176 = vector.load %arg7[%c0_80, %c0_81, %c0_82] : memref<1x8x32xf32, #tpu.memory_space<vmem>>, vector<1x8x32xf32>
    %177 = vector.shape_cast %176 : vector<1x8x32xf32> to vector<8x32xf32>
    %178 = vector.shape_cast %175 : vector<8x32xf32> to vector<1x8x32xf32>
    tpu.vector_store %arg7[%c0_80, %c0_81, %c0_82], %178 {strides = array<i32>} : memref<1x8x32xf32, #tpu.memory_space<vmem>>, vector<1x8x32xf32>,
    return
  }
  func.func @transform_0(%arg0: i32) -> (i32, i32, i32) {
    %c0_i32 = arith.constant 0 : i32
    %c0_i32_0 = arith.constant 0 : i32
    %c0_i32_1 = arith.constant 0 : i32
    return %arg0, %c0_i32, %c0_i32_0 : i32, i32, i32
  }
  func.func @transform_1(%arg0: i32) -> (i32, i32, i32) {
    %c0_i32 = arith.constant 0 : i32
    %c0_i32_0 = arith.constant 0 : i32
    %c0_i32_1 = arith.constant 0 : i32
    return %arg0, %c0_i32, %c0_i32_0 : i32, i32, i32
  }
  func.func @transform_2(%arg0: i32) -> (i32, i32) {
    %c0_i32 = arith.constant 0 : i32
    %c0_i32_0 = arith.constant 0 : i32
    %c0_i32_1 = arith.constant 0 : i32
    return %c0_i32, %c0_i32_0 : i32, i32
  }
  func.func @transform_3(%arg0: i32) -> (i32, i32) {
    %c0_i32 = arith.constant 0 : i32
    %c0_i32_0 = arith.constant 0 : i32
    %c0_i32_1 = arith.constant 0 : i32
    return %c0_i32, %c0_i32_0 : i32, i32
  }
  func.func @transform_4(%arg0: i32) -> (i32, i32) {
    %c0_i32 = arith.constant 0 : i32
    %c0_i32_0 = arith.constant 0 : i32
    %c0_i32_1 = arith.constant 0 : i32
    return %c0_i32, %c0_i32_0 : i32, i32
  }
  func.func @transform_5(%arg0: i32) -> (i32, i32) {
    %c0_i32 = arith.constant 0 : i32
    %c0_i32_0 = arith.constant 0 : i32
    %c0_i32_1 = arith.constant 0 : i32
    return %c0_i32, %c0_i32_0 : i32, i32
  }
  func.func @transform_6(%arg0: i32) -> (i32, i32, i32) {
    %c0_i32 = arith.constant 0 : i32
    %c0_i32_0 = arith.constant 0 : i32
    %c0_i32_1 = arith.constant 0 : i32
    return %arg0, %c0_i32, %c0_i32_0 : i32, i32, i32
  }
  func.func @transform_7(%arg0: i32) -> (i32, i32, i32, i32) {
    %c0_i32 = arith.constant 0 : i32
    %c0_i32_0 = arith.constant 0 : i32
    %c0_i32_1 = arith.constant 0 : i32
    %c0_i32_2 = arith.constant 0 : i32
    return %arg0, %c0_i32, %c0_i32_0, %c0_i32_1 : i32, i32, i32, i32
  }
}

</mosaic_0001>

<bundles_post_ra>
// kernel: tpu_custom_call.1
= control target key start
LH: loop header
LB: loop body
LE: loop exit
PB: predicated region body
PF: predicated region fallthrough
CT: control target
= control target key end

     0   :  { %s3433_s0 = inlined_call_operand.hbm [shape: f32[2,8,32], index: 0, kind: input, shape index: {}]   ;;  %s3434_s1 = inlined_call_operand.hbm [shape: f32[2,8,32], index: 1, kind: input, shape index: {}]   ;;  %s3435_s2 = inlined_call_operand.hbm [shape: f32[32,32], index: 2, kind: input, shape index: {}]   ;;  %s3436_s3 = inlined_call_operand.hbm [shape: f32[32,64], index: 3, kind: input, shape index: {}]   ;;  %s3437_s4 = inlined_call_operand.hbm [shape: f32[32,32], index: 4, kind: input, shape index: {}]   ;;  %s3438_s5 = inlined_call_operand.vmem [shape: f32[1,32], index: 5, kind: input, shape index: {}]   ;;  %s3439_s6 = inlined_call_operand.hbm [shape: f32[2,8,32], index: 6, kind: output, shape index: {0}]   ;;  %s3440_s7 = inlined_call_operand.hbm [shape: f32[2,8,8,8], index: 7, kind: output, shape index: {1}]  }
   0x1   :  { %3446 = sst [smem:[#allocation21_spill]] %s3435_s2 }
   0x2   :  { %3447 = sst [smem:[#allocation22_spill]] %s3436_s3 }
   0x3   :  { %3448 = sst [smem:[#allocation23_spill]] %s3437_s4 }
   0x4   :  { %13 = vsyncpa [#allocation3], 0 }
   0x5   :  { %15 = vsyncpa [#allocation3 + $0x1], 0 }
   0x6   :  { %16 = vsyncpa [#allocation6], 0 }
   0x7   :  { %18 = vsyncpa [#allocation6 + $0x1], 0 }
   0x8   :  { %19 = vsyncpa [#allocation9], 0 }
   0x9   :  { %20 = vsyncpa [#allocation4], 0 }
   0xa   :  { %22 = vsyncpa [#allocation4 + $0x1], 0 }
   0xb   :  { %23 = vsyncpa [#allocation13], 0 }
   0xc   :  { %25 = vsyncpa [#allocation13 + $0x1], 0  ;;  %s2915_s24 = smov 0   ;;  %s2917_s25 = smov 0  }
   0xd   :  { %s2919_s26 = smov 0   ;;  %s2921_s27 = smov 0  }
   0xe LB: > { %s2936_s28 = sadd.s32 4294967295, %s2838_s27   ;;  %s2198_s29 = sadd.s32 4294967294, %s2838_s27   ;;  %s2838_s27 = sphi %s2921_s27, %s3474_s27   ;;  %s2834_s26 = sphi %s2919_s26, %s3473_s26   ;;  %s2830_s25 = sphi %s2917_s25, %s3472_s25   ;;  %s2826_s24 = sphi %s2915_s24, %s3471_s24  }
   0xf   : > { %p51_p0 = scmp.ne.s32.totalorder %s2830_s25, %s2826_s24  ;;  %p3441_p1 = scmp.eq.s32.totalorder %s2936_s28, 0 }
  0x10   : > { %p191_p3 = scmp.eq.s32.totalorder %s2198_s29, 1  ;;  %p2199_p5 = scmp.ge.s32.totalorder %s2838_s27, 1 }
  0x11   : > { %p2945_p4 = por %p3441_p1, %p51_p0  ;;  %p224_p7 = scmp.lt.s32.totalorder %s2838_s27, 3 }
  0x12   : > { %p2950_p6 = por %p191_p3, %p51_p0  ;;  %s2840_s10 = smov [#allocation7]  }
  0x13   : > { %s3449_s30 = scalar_select %p2945_p4, 1, 0 }
  0x14   : > { %s3450_s8 = scalar_select %p2950_p6, 1, 0 }
  0x15   : > { %p2955_p8 = pnand %p2199_p5, %p224_p7  ;;  %s236_s11 = sshll.u32 %s2840_s10, 4  ;;  %s2959_s11 = int_to_ptr.vmem [resolvable:$true] %s236_s11 }
  0x16   : > { %3451 = sst [smem:[#allocation20_spill]] %s3450_s8  ;;  %s2841_s13 = smov [#allocation8]  }
  0x17   : > { %s3452_s9 = scalar_select %p2955_p8, 1, 0 }
  0x18   : > { %p2457_p9 = pneg %p2955_p8  ;;  %s249_s14 = sshll.u32 %s2841_s13, 4  ;;  %s2970_s14 = int_to_ptr.vmem [resolvable:$true] %s249_s14 }
  0x19   : > { %s2842_s15 = smov [#allocation10]   ;;  %s3454_s2 = sld [smem:[#allocation21_spill]] }
  0x1a   : > { %p2966_p11 = pnand %p2457_p9, %p3441_p1  ;;  %s2972_s16 = sshll.u32 %s2842_s15, 4  ;;  %s263_s16 = int_to_ptr.vmem [resolvable:$true] %s2972_s16 }
  0x1c   : > { %p2982_p13 = pneg %p2966_p11 }
  0x1f   : > { %s2584_s19 = scalar_lea.hbm %s3454_s2, 512 }
  0x20   : > { %p2585_p12 = scmp.ne.s32.totalorder %s3454_s2, %s2584_s19  ;;  %p2591_p5 = scmp.lt.u32.totalorder %s2584_s19, %s3454_s2 }
  0x22   : > { %p2587_p0 = pnand %p2982_p13, %p2585_p12 }
  0x24   : > { %p2588_p3 = pneg %p2587_p0 }
  0x26   : > { %p2593_p7 = pnand %p2591_p5, %p2588_p3 }
  0x28   : > { %2596 = shalt.err (!%p2593_p7)
}
  0x29   : > { %s2597_s10 = scalar_lea.vmem %s2959_s11, 512  ;;  %p2605_p2 = scmp.lt.s32.totalorder %s2959_s11, %s2959_s11 }
  0x2a   : > { %p2598_p9 = scmp.ne.s32.totalorder %s2959_s11, %s2597_s10  ;;  %p2606_p6 = scmp.lt.s32.totalorder %s2597_s10, %s2597_s10 }
  0x2c   : > { %p2600_p10 = pnand %p2598_p9, %p2982_p13  ;;  %p2607_p12 = por %p2606_p6, %p2605_p2 }
  0x2e   : > { %p2601_p1 = pneg %p2600_p10 }
  0x30   : > { %p2608_p0 = pnand %p2607_p12, %p2601_p1 }
  0x32   : > { %2611 = shalt.err (!%p2608_p0)
}
  0x33   : > { %s2843_s13 = smov 128   ;;  %s2844_s15 = smov 8  }
  0x34   : > { %2460 = dma.hbm_to_vmem [thread:$0]  (!%p2966_p11), %s3454_s2, 512, %s2959_s11, [#allocation6], %s2843_s13, %s2843_s13, %s2844_s15  }
  0x35   : > { %s3456_s3 = sld [smem:[#allocation22_spill]] }
  0x3b   : > { %s2612_s21 = scalar_lea.hbm %s3456_s3, 512 }
  0x3c   : > { %p2613_p1 = scmp.ne.s32.totalorder %s3456_s3, %s2612_s21  ;;  %p2619_p10 = scmp.lt.u32.totalorder %s2612_s21, %s3456_s3 }
  0x3e   : > { %p2615_p2 = pnand %p2613_p1, %p2982_p13 }
  0x40   : > { %p2616_p6 = pneg %p2615_p2 }
  0x42   : > { %p2621_p3 = pnand %p2619_p10, %p2616_p6 }
  0x44   : > { %2624 = shalt.err (!%p2621_p3)
}
  0x45   : > { %s2625_s11 = scalar_lea.vmem %s2970_s14, 512  ;;  %p2633_p12 = scmp.lt.s32.totalorder %s2970_s14, %s2970_s14 }
  0x46   : > { %p2626_p5 = scmp.ne.s32.totalorder %s2970_s14, %s2625_s11  ;;  %p2634_p0 = scmp.lt.s32.totalorder %s2625_s11, %s2625_s11 }
  0x48   : > { %p2628_p7 = pnand %p2626_p5, %p2982_p13  ;;  %p2635_p1 = por %p2634_p0, %p2633_p12 }
  0x4a   : > { %p2629_p9 = pneg %p2628_p7 }
  0x4c   : > { %p2636_p2 = pnand %p2635_p1, %p2629_p9 }
  0x4e   : > { %2639 = shalt.err (!%p2636_p2)
}
  0x4f   : > { %2463 = dma.hbm_to_vmem [thread:$0]  (!%p2966_p11), %s3456_s3, 512, %s2970_s14, [#allocation9], %s2843_s13, %s2843_s13, %s2844_s15  }
  0x50   : > { %s3457_s4 = sld [smem:[#allocation23_spill]] }
  0x56   : > { %s2640_s20 = scalar_lea.hbm %s3457_s4, 512 }
  0x57   : > { %p2641_p6 = scmp.ne.s32.totalorder %s3457_s4, %s2640_s20  ;;  %p2647_p5 = scmp.lt.u32.totalorder %s2640_s20, %s3457_s4 }
  0x59   : > { %p2643_p10 = pnand %p2641_p6, %p2982_p13 }
  0x5b   : > { %p2644_p3 = pneg %p2643_p10 }
  0x5d   : > { %p2649_p7 = pnand %p2647_p5, %p2644_p3 }
  0x5f   : > { %2652 = shalt.err (!%p2649_p7)
}
  0x60   : > { %s2653_s11 = scalar_lea.vmem %s263_s16, 512  ;;  %p2661_p1 = scmp.lt.s32.totalorder %s263_s16, %s263_s16 }
  0x61   : > { %p2654_p9 = scmp.ne.s32.totalorder %s263_s16, %s2653_s11  ;;  %p2662_p2 = scmp.lt.s32.totalorder %s2653_s11, %s2653_s11 }
  0x63   : > { %p2656_p12 = pnand %p2654_p9, %p2982_p13  ;;  %p2663_p4 = por %p2662_p2, %p2661_p1 }
  0x65   : > { %p2657_p0 = pneg %p2656_p12 }
  0x67   : > { %p2664_p8 = pnand %p2663_p4, %p2657_p0 }
  0x69   : > { %2667 = shalt.err (!%p2664_p8)
}
  0x6a   : > { %2466 = dma.hbm_to_vmem [thread:$0]  (!%p2966_p11), %s3457_s4, 512, %s263_s16, [#allocation9], %s2843_s13, %s2843_s13, %s2844_s15  }
  0x6b   : > { %s3055_s22 = sadd.s32 1, %s2838_s27   ;;  %s38_s17 = sadd.s32 1, %s2834_s26 }
  0x6c   : > { %s35_s12 = ssub.s32 %s2838_s27, %s3055_s22  ;;  %p45_p8 = scmp.ne.s32.totalorder %s2834_s26, %s2830_s25 }
  0x6d   : > { %p36_p4 = scmp.eq.s32.totalorder %s35_s12, 0  ;;  %p46_p13 = scmp.eq.s32.totalorder %s2838_s27, 0 }
  0x6e   : > { %p2484_p6 = scmp.lt.s32.totalorder %s2838_s27, 2  ;;  %p3458_p3 = scmp.eq.s32.totalorder %s2936_s28, 1 }
  0x6f   : > { %s3065_s18 = scalar_select %p36_p4, %s2834_s26, %s38_s17  }
  0x70   : > { %p47_p10 = por %p46_p13, %p45_p8  ;;  %p3069_p5 = por %p3458_p3, %p45_p8 }
  0x71   : > { %s279_s20 = sand.u32 1, %s2834_s26   ;;  %s2205_s21 = sshll.u32 %s2838_s27, 7 }
  0x72   : > { %s3459_s19 = scalar_select %p3069_p5, 1, 0 }
  0x73   : > { %s3075_s16 = sshll.u32 %s279_s20, 3  ;;  %s3080_s23 = scalar_lea.hbm %s3433_s0, %s2205_s21 }
  0x74   : > { %s283_s29 = scalar_lea.vmem [#allocation2], %s3075_s16  ;;  %p3083_p11 = pnand %p2484_p6, %p47_p10 }
  0x75   : > { %s290_s10 = sshll.u32 %s283_s29, 4  ;;  %s3092_s12 = scalar_lea.hbm %s3434_s1, %s2205_s21  ;;  %s3087_s10 = int_to_ptr.vmem [resolvable:$true] %s290_s10 }
  0x76   : > { %s280_s17 = scalar_lea.sflag [#allocation3], %s279_s20  ;;  %s2668_s13 = scalar_lea.hbm %s3080_s23, 128 }
  0x77   : > { %p2669_p7 = scmp.ne.s32.totalorder %s3080_s23, %s2668_s13  ;;  %p2670_p9 = pneg %p3083_p11 }
  0x78   : > { %s2673_s2 = scalar_lea.hbm %s3433_s0, 256  ;;  %p2674_p1 = scmp.lt.u32.totalorder %s3080_s23, %s3433_s0 }
  0x79   : > { %p2671_p12 = pnand %p2670_p9, %p2669_p7  ;;  %p2675_p2 = scmp.lt.u32.totalorder %s2673_s2, %s2668_s13 }
  0x7a   : > { %p2677_p8 = scmp.lt.u32.totalorder %s2668_s13, %s3080_s23 }
  0x7b   : > { %p2672_p0 = pneg %p2671_p12  ;;  %p2676_p4 = por %p2675_p2, %p2674_p1 }
  0x7d   : > { %p2678_p13 = por %p2677_p8, %p2676_p4 }
  0x7f   : > { %p2679_p6 = pnand %p2678_p13, %p2672_p0 }
  0x81   : > { %2682 = shalt.err (!%p2679_p6)
}
  0x82   : > { %s2683_s20 = scalar_lea.vmem %s3087_s10, 128  ;;  %s2845_s21 = smov [#allocation2]  }
  0x83   : > { %p2684_p10 = scmp.ne.s32.totalorder %s3087_s10, %s2683_s20  ;;  %s2688_s14 = sshll.u32 %s2845_s21, 4  ;;  %s2689_s14 = int_to_ptr.vmem [resolvable:$false] %s2688_s14 }
  0x84   : > { %s2690_s3 = scalar_lea.vmem %s2689_s14, 256  ;;  %p2691_p12 = scmp.lt.s32.totalorder %s3087_s10, %s2689_s14 }
  0x85   : > { %p2686_p3 = pnand %p2684_p10, %p2670_p9  ;;  %p2692_p1 = scmp.lt.s32.totalorder %s2690_s3, %s2683_s20 }
  0x87   : > { %p2687_p7 = pneg %p2686_p3  ;;  %p2693_p2 = por %p2692_p1, %p2691_p12 }
  0x89   : > { %p2694_p4 = pnand %p2693_p2, %p2687_p7 }
  0x8b   : > { %2697 = shalt.err (!%p2694_p4)
}
  0x8c   : > { %2470 = dma.hbm_to_vmem [thread:$0]  (!%p3083_p11), %s3080_s23, 128, %s3087_s10, %s280_s17  }
  0x8d   : > { %s297_s2 = sand.u32 1, %s2838_s27   ;;  %s301_s4 = scalar_lea.vmem [#allocation5], %s3075_s16 }
  0x8e   : > { %s308_s8 = sshll.u32 %s301_s4, 4  ;;  %s298_s13 = scalar_lea.sflag [#allocation6], %s297_s2  ;;  %s309_s8 = int_to_ptr.vmem [resolvable:$true] %s308_s8 }
  0x8f   : > { %s2698_s15 = scalar_lea.hbm %s3092_s12, 128  ;;  %s2703_s21 = scalar_lea.hbm %s3434_s1, 256 }
  0x90   : > { %p2699_p0 = scmp.ne.s32.totalorder %s3092_s12, %s2698_s15  ;;  %p2704_p6 = scmp.lt.u32.totalorder %s3092_s12, %s3434_s1 }
  0x91   : > { %p2705_p10 = scmp.lt.u32.totalorder %s2703_s21, %s2698_s15  ;;  %p2707_p7 = scmp.lt.u32.totalorder %s2698_s15, %s3092_s12 }
  0x92   : > { %p2701_p8 = pnand %p2699_p0, %p2670_p9 }
  0x93   : > { %p2706_p3 = por %p2705_p10, %p2704_p6 }
  0x94   : > { %p2702_p13 = pneg %p2701_p8 }
  0x95   : > { %p2708_p12 = por %p2707_p7, %p2706_p3 }
  0x97   : > { %p2709_p1 = pnand %p2708_p12, %p2702_p13 }
  0x99   : > { %2712 = shalt.err (!%p2709_p1)
}
  0x9a   : > { %s2713_s16 = scalar_lea.vmem %s309_s8, 128  ;;  %s2846_s23 = smov [#allocation5]  }
  0x9b   : > { %p2714_p2 = scmp.ne.s32.totalorder %s309_s8, %s2713_s16  ;;  %s2718_s10 = sshll.u32 %s2846_s23, 4  ;;  %s2719_s10 = int_to_ptr.vmem [resolvable:$false] %s2718_s10 }
  0x9c   : > { %s2720_s17 = scalar_lea.vmem %s2719_s10, 256  ;;  %p2721_p8 = scmp.lt.s32.totalorder %s309_s8, %s2719_s10 }
  0x9d   : > { %p2716_p4 = pnand %p2714_p2, %p2670_p9  ;;  %p2722_p5 = scmp.lt.s32.totalorder %s2720_s17, %s2713_s16 }
  0x9f   : > { %p2717_p0 = pneg %p2716_p4  ;;  %p2723_p6 = por %p2722_p5, %p2721_p8 }
  0xa1   : > { %p2724_p10 = pnand %p2723_p6, %p2717_p0 }
  0xa3   : > { %2727 = shalt.err (!%p2724_p10)
}
  0xa4   : > { %2473 = dma.hbm_to_vmem [thread:$0]  (!%p3083_p11), %s3092_s12, 128, %s309_s8, %s298_s13  }
  0xa5   : > { %p3461_p13 = scmp.ne.s32.totalorder %s3452_s9, 0 }
  0xa6   : > { %s3143_s2 = sand.u32 (!%p3461_p13), 1, %s2830_s25   ;;  %p3462_p5 = scmp.ne.s32.totalorder (!%p3461_p13), %s3449_s30, 0 }
  0xa7   : > { %317 = sbr.rel (%p3461_p13) target bundleno = 1681 (0x691), region = 44  ;;  %s3146_s4 = sshll.u32 (!%p3461_p13), %s3143_s2, 3 }
  0xa8   : > { %s320_s15 = scalar_lea.sflag (!%p3461_p13), [#allocation3], %s3143_s2  ;;  %s323_s29 = scalar_lea.vmem (!%p3461_p13), [#allocation2], %s3146_s4 }
  0xae   : > { %2801 = dma.done.wait (%p3462_p5), %s320_s15, 128  }
  0xaf   : > { %2803 = vsyncadd (%p3462_p5), %s320_s15, 4294967168  ;;  %s328_s9 = sand.u32 1, %s2936_s28   ;;  %s332_s12 = scalar_lea.vmem [#allocation5], %s3146_s4 }
  0xb0   : > { %s329_s11 = scalar_lea.sflag [#allocation6], %s328_s9 }
  0xb1   : > { %2805 = dma.done.wait (%p3462_p5), %s329_s11, 128  }
  0xb2   : > { %2807 = vsyncadd (%p3462_p5), %s329_s11, 4294967168  ;;  %p3463_p11 = scmp.eq.s32.totalorder %s2936_s28, 0 }
  0xb4   : > { %2809 = dma.done.wait (%p3463_p11), [#allocation6], 512   ;;  %p3464_p9 = pmov %p3463_p11 }
  0xb6   : > { %2811 = vsyncadd (%p3464_p9), [#allocation6], 4294966784  ;;  %p3465_p3 = pmov %p3464_p9 }
  0xb8   : > { %2813 = dma.done.wait (%p3465_p3), [#allocation9], 1024   ;;  %p3466_p7 = pmov %p3465_p3 }
  0xb9   : > { %v2847_v0 = vmov 0.0|0.0   ;;  %vm2848_vm0 = vmmov 0   ;;  %v2849_v1 = vmov 0.0   ;;  %v465_v2 = vld [vmem:[#allocation8] sm:$0xff]  ;;  %v466_v3 = vld [vmem:[#allocation8 + $0x8] sm:$0xff]  ;;  %v467_v7 = vld [vmem:[#allocation8 + $0x10] sm:$0xff] }
  0xba   : > { %2815 = vsyncadd (%p3466_p7), [#allocation9], 4294966272  ;;  %2425 = vmatprep.subr.bf16.mxu1 %v2847_v0  ;;  %2419 = vmatprep.subr.bf16.mxu0 %v2847_v0  ;;  %v386_v4 = vld [vmem:[#allocation7] sm:$0xff]  ;;  %v2426_v5 = vpack.c.bf16 %v466_v3, %v465_v2  ;;  %v387_v6 = vld [vmem:[#allocation7 + $0x8] sm:$0xff]  ;;  %vm390_vm1 = vcmask 261120   ;;  %vm542_vm2 = vcmask 31744  }
  0xbb   : > { %2325 = vmatprep.mubr.msk.f32.mxu1 %vm2848_vm0, %v2849_v1  ;;  %2314 = vmatprep.mubr.msk.f32.mxu0 %vm2848_vm0, %v2849_v1  ;;  %v468_v8 = vld [vmem:[#allocation8 + $0x18] sm:$0xff]  ;;  %v2420_v9 = vpack.c.bf16 %v387_v6, %v386_v4  ;;  %v388_v10 = vld [vmem:[#allocation7 + $0x10] sm:$0xff]  ;;  %v385_v15 = vld [vmem:[%s323_s29] sm:$0xff]  ;;  %s2850_s30 = smov 120   ;;  %s2851_s8 = smov 124   ;;  %vm620_vm3 = vcmask 64512  }
  0xbc   : > { %v389_v11 = vld [vmem:[#allocation7 + $0x18] sm:$0xff]  ;;  %2427 = vmatpush3.bf16.msra.mxu1 %v2426_v5  ;;  %v2429_v12 = vpack.c.bf16 %v468_v8, %v467_v7  ;;  %s2852_s13 = smov 116   ;;  %s2853_s20 = smov 112   ;;  %vm1915_vm4 = vcmask 97280   ;;  %vm1917_vm5 = vcmask 130048   ;;  %vm1919_vm6 = vcmask 162816  }
  0xbd   : > { %2421 = vmatpush3.bf16.msra.mxu0 %v2420_v9  ;;  %2428 = vmatprep.subr.bf16.mxu1 %v2847_v0  ;;  %v2423_v13 = vpack.c.bf16 %v389_v11, %v388_v10  ;;  %v464_v14 = vld [vmem:[%s332_s12] sm:$0xff]  ;;  %s2854_s21 = smov 108   ;;  %s2855_s14 = smov 104   ;;  %vm1921_vm7 = vcmask 195584   ;;  %vm1923_vm8 = vcmask 228352  }
  0xbe   : > { %2422 = vmatprep.subr.bf16.mxu0 %v2847_v0  ;;  %s2856_s3 = smov 100   ;;  %s2857_s16 = smov 92  }
  0xbf   : > { %s2858_s23 = smov 96   ;;  %s2859_s10 = smov 84  }
  0xc0   : > { %2430 = vmatpush3.bf16.msra.mxu1 %v2429_v12  ;;  %s2860_s17 = smov 88   ;;  %s2861_s15 = smov 76  }
  0xc1   : > { %2424 = vmatpush3.bf16.msra.mxu0 %v2423_v13  ;;  %2328 = vmatprep.subr.mxu1 %v2849_v1  ;;  %s2862_s29 = smov 80   ;;  %s2215_s9 = sshll.u32 %s3143_s2, 6 }
  0xc2   : > { %2338 = vmatprep.subr.mxu0 %v2849_v1  ;;  %s3285_s11 = scalar_lea.vmem [#allocation12], %s2215_s9  ;;  %s2863_s12 = smov 68  }
  0xc3   : > { %2326 = vmatmul.mubr.msk.f32.vlgmr.msra.gmra.mrb[0].mxu1 %vm390_vm1, %v464_v14  ;;  %s2016_s9 = scalar_lea.sflag [#allocation13], %s3143_s2  ;;  %p3467_p1 = scmp.ne.s32.totalorder %s3459_s19, 0 }
  0xc4   : > { %2315 = vmatmul.mubr.msk.f32.vlgmr.msra.gmra.mrb[0].mxu0 %vm390_vm1, %v385_v15  ;;  %2330 = vmatprep.mubr.msk.f32.mxu1 %vm2848_vm0, %v2849_v1 }
  0xc5   : > { %2340 = vmatprep.mubr.msk.f32.mxu0 %vm2848_vm0, %v2849_v1 }
 0x196   : > { %v3188_v16 = vpop.f32.mrb[0].mxu1 }
 0x197   : > { %879 = vrot.lane.b32.xlu1 %v3188_v16, %s2850_s30  ;;  %711 = vrot.lane.b32.xlu0 %v3188_v16, %s2851_s8  ;;  %v2327_v17 = vpop.f32.mrb[1].mxu1  ;;  %v460_v18 = vpop.f32.mrb[0].mxu0 }
 0x198   : > { %2329 = vmatpush3.xpose.msk.msra.mxu1 %vm542_vm2, %v3188_v16  ;;  %v2316_v19 = vpop.f32.mrb[1].mxu0 }
 0x199   : > { %2333 = vmatprep.subr.mxu1 %v2849_v1 }
 0x19b   : > { %2331 = vmatmul.mubr.msk.f32.vlgmr.msra.gmra.mrb[2].mxu1 %vm542_vm2, %v460_v18  ;;  %877 = vrot.lane.b32.xlu1 %v460_v18, %s2850_s30  ;;  %s2864_s30 = smov 72  }
 0x19c   : > { %709 = vrot.lane.b32.xlu0 %v460_v18, %s2851_s8  ;;  %2335 = vmatprep.mubr.msk.f32.mxu1 %vm2848_vm0, %v2849_v1  ;;  %s2865_s8 = smov 4  }
 0x19f   : > { %1045 = vrot.lane.b32.xlu1 %v460_v18, %s2852_s13 }
 0x1a0   : > { %1047 = vrot.lane.b32.xlu0 %v3188_v16, %s2852_s13  ;;  %s2866_s13 = smov 8  }
 0x1a3   : > { %1213 = vrot.lane.b32.xlu1 %v460_v18, %s2853_s20 }
 0x1a4   : > { %1215 = vrot.lane.b32.xlu0 %v3188_v16, %s2853_s20  ;;  %s2867_s20 = smov 12  }
 0x1a7   : > { %1381 = vrot.lane.b32.xlu1 %v460_v18, %s2854_s21 }
 0x1a8   : > { %1383 = vrot.lane.b32.xlu0 %v3188_v16, %s2854_s21  ;;  %s2868_s21 = smov 16  }
 0x1ab   : > { %1549 = vrot.lane.b32.xlu1 %v460_v18, %s2855_s14 }
 0x1ac   : > { %1551 = vrot.lane.b32.xlu0 %v3188_v16, %s2855_s14  ;;  %s2869_s14 = smov 20  }
 0x1af   : > { %1717 = vrot.lane.b32.xlu1 %v460_v18, %s2856_s3 }
 0x1b0   : > { %1719 = vrot.lane.b32.xlu0 %v3188_v16, %s2856_s3  ;;  %s2870_s3 = smov 24  }
 0x1b3   : > { %801 = vrot.lane.b32.xlu1 %v3188_v16, %s2857_s16  ;;  %s2871_s16 = smov 28  }
 0x1b4   : > { %633 = vrot.lane.b32.xlu0 %v3188_v16, %s2858_s23  ;;  %s2258_s23 = sshll.u32 %s2936_s28, 10 }
 0x209   : > { %v880_v20 = vpop.permute.xlu1 %879  ;;  %v712_v21 = vpop.permute.xlu0 %711 }
 0x20a   : > { %2339 = vmatpush3.xpose.msk.msra.mxu0 %vm542_vm2, %v712_v21 }
 0x20b   : > { %2348 = vmatprep.subr.mxu0 %v2849_v1 }
 0x20d   : > { %v878_v22 = vpop.permute.xlu1 %877 }
 0x20e   : > { %v710_v23 = vpop.permute.xlu0 %709 }
 0x20f   : > { %2341 = vmatmul.mubr.msk.f32.vlgmr.msra.gmra.mrb[2].mxu0 %vm542_vm2, %v710_v23 }
 0x210   : > { %2349 = vmatpush3.xpose.msk.msra.mxu0 %vm542_vm2, %v880_v20  ;;  %2350 = vmatprep.mubr.msk.f32.mxu0 %vm2848_vm0, %v2849_v1 }
 0x211   : > { %v1046_v24 = vpop.permute.xlu1 %1045  ;;  %2358 = vmatprep.subr.mxu0 %v2849_v1 }
 0x212   : > { %v1048_v25 = vpop.permute.xlu0 %1047 }
 0x213   : > { %2351 = vmatmul.mubr.msk.f32.vlgmr.msra.gmra.mrb[4].mxu0 %vm542_vm2, %v878_v22 }
 0x214   : > { %2359 = vmatpush3.xpose.msk.msra.mxu0 %vm542_vm2, %v1048_v25  ;;  %2360 = vmatprep.mubr.msk.f32.mxu0 %vm2848_vm0, %v2849_v1 }
 0x215   : > { %v1214_v26 = vpop.permute.xlu1 %1213  ;;  %2368 = vmatprep.subr.mxu0 %v2849_v1 }
 0x216   : > { %v1216_v27 = vpop.permute.xlu0 %1215 }
 0x217   : > { %2361 = vmatmul.mubr.msk.f32.vlgmr.msra.gmra.mrb[6].mxu0 %vm542_vm2, %v1046_v24 }
 0x218   : > { %2369 = vmatpush3.xpose.msk.msra.mxu0 %vm542_vm2, %v1216_v27  ;;  %2370 = vmatprep.mubr.msk.f32.mxu0 %vm2848_vm0, %v2849_v1 }
 0x219   : > { %2378 = vmatprep.subr.mxu0 %v2849_v1  ;;  %v1382_v28 = vpop.permute.xlu1 %1381 }
 0x21a   : > { %v1384_v29 = vpop.permute.xlu0 %1383 }
 0x21b   : > { %2371 = vmatmul.mubr.msk.f32.vlgmr.msra.gmra.mrb[8].mxu0 %vm542_vm2, %v1214_v26 }
 0x21c   : > { %2379 = vmatpush3.xpose.msk.msra.mxu0 %vm542_vm2, %v1384_v29  ;;  %2380 = vmatprep.mubr.msk.f32.mxu0 %vm2848_vm0, %v2849_v1 }
 0x21d   : > { %2388 = vmatprep.subr.mxu0 %v2849_v1  ;;  %v1550_v31 = vpop.permute.xlu1 %1549 }
 0x21e   : > { %v1552_v30 = vpop.permute.xlu0 %1551 }
 0x21f   : > { %2381 = vmatmul.mubr.msk.f32.vlgmr.msra.gmra.mrb[10].mxu0 %vm542_vm2, %v1382_v28 }
 0x220   : > { %2389 = vmatpush3.xpose.msk.msra.mxu0 %vm542_vm2, %v1552_v30  ;;  %2390 = vmatprep.mubr.msk.f32.mxu0 %vm2848_vm0, %v2849_v1 }
 0x221   : > { %2398 = vmatprep.subr.mxu0 %v2849_v1  ;;  %v1718_v33 = vpop.permute.xlu1 %1717 }
 0x222   : > { %v1720_v32 = vpop.permute.xlu0 %1719 }
 0x223   : > { %2391 = vmatmul.mubr.msk.f32.vlgmr.msra.gmra.mrb[12].mxu0 %vm542_vm2, %v1550_v31 }
 0x224   : > { %2399 = vmatpush3.xpose.msk.msra.mxu0 %vm542_vm2, %v1720_v32  ;;  %2400 = vmatprep.mubr.msk.f32.mxu0 %vm2848_vm0, %v2849_v1 }
 0x225   : > { %2431 = vmatprep.subr.bf16.mxu0 %v2847_v0  ;;  %v3252_v10 = vpop.permute.xlu1 %801 }
 0x226   : > { %v634_v34 = vpop.permute.xlu0 %633 }
 0x227   : > { %2334 = vmatpush3.msra.mxu1 %v634_v34  ;;  %2401 = vmatmul.mubr.msk.f32.vlgmr.msra.gmra.mrb[14].mxu0 %vm542_vm2, %v1718_v33 }
 0x228   : > { %2343 = vmatprep.subr.mxu1 %v2849_v1  ;;  %2416 = vmatprep.mubr.msk.f32.mxu0 %vm2848_vm0, %v2849_v1 }
 0x26e   : > { %v615_v35 = vpop.f32.mrb[2].mxu1 }
 0x26f   : > { %v619_v36 = vmul.f32 0.5, %v615_v35  ;;  %v2332_v37 = vpop.f32.mrb[3].mxu1 }
 0x271   : > { %v621_v38 = vsel %vm620_vm3, %v619_v36, -inf }
 0x272   : > { %622 = vmax.xlane.f32.xlu0 %v621_v38 }
 0x2e2   : > { %v783_v39 = vpop.f32.mrb[2].mxu0 }
 0x2e3   : > { %v787_v40 = vmul.f32 0.5, %v783_v39  ;;  %v2342_v41 = vpop.f32.mrb[3].mxu0 }
 0x2e5   : > { %v788_v42 = vsel %vm620_vm3, %v787_v40, -inf }
 0x2e6   : > { %789 = vmax.xlane.f32.xlu1 %v788_v42  ;;  %v951_v43 = vpop.f32.mrb[4].mxu0 }
 0x2e7   : > { %v955_v44 = vmul.f32 0.5, %v951_v43  ;;  %v2352_v45 = vpop.f32.mrb[5].mxu0 }
 0x2e9   : > { %v956_v46 = vsel %vm620_vm3, %v955_v44, -inf }
 0x2ea   : > { %957 = vmax.xlane.f32.xlu0 %v956_v46  ;;  %v1119_v47 = vpop.f32.mrb[6].mxu0 }
 0x2eb   : > { %v1123_v48 = vmul.f32 0.5, %v1119_v47  ;;  %v2362_v49 = vpop.f32.mrb[7].mxu0 }
 0x2ed   : > { %v1124_v50 = vsel %vm620_vm3, %v1123_v48, -inf }
 0x2ee   : > { %1125 = vmax.xlane.f32.xlu0 %v1124_v50  ;;  %v1287_v51 = vpop.f32.mrb[8].mxu0 }
 0x2ef   : > { %v1291_v52 = vmul.f32 0.5, %v1287_v51  ;;  %v2372_v53 = vpop.f32.mrb[9].mxu0 }
 0x2f1   : > { %v1292_v54 = vsel %vm620_vm3, %v1291_v52, -inf }
 0x2f2   : > { %1293 = vmax.xlane.f32.xlu1 %v1292_v54  ;;  %v1455_v55 = vpop.f32.mrb[10].mxu0 }
 0x2f3   : > { %v1459_v56 = vmul.f32 0.5, %v1455_v55  ;;  %v2382_v57 = vpop.f32.mrb[11].mxu0 }
 0x2f5   : > { %v1460_v58 = vsel %vm620_vm3, %v1459_v56, -inf }
 0x2f6   : > { %1461 = vmax.xlane.f32.xlu0 %v1460_v58  ;;  %v1623_v59 = vpop.f32.mrb[12].mxu0 }
 0x2f7   : > { %v1627_v60 = vmul.f32 0.5, %v1623_v59  ;;  %v2392_v61 = vpop.f32.mrb[13].mxu0 }
 0x2f9   : > { %v1628_v62 = vsel %vm620_vm3, %v1627_v60, -inf }
 0x2fa   : > { %1629 = vmax.xlane.f32.xlu1 %v1628_v62  ;;  %v1791_v63 = vpop.f32.mrb[14].mxu0 }
 0x2fb   : > { %v1795_v2 = vmul.f32 0.5, %v1791_v63  ;;  %v2402_v3 = vpop.f32.mrb[15].mxu0 }
 0x2fd   : > { %v1796_v4 = vsel %vm620_vm3, %v1795_v2, -inf }
 0x2fe   : > { %1797 = vmax.xlane.f32.xlu0 %v1796_v4 }
 0x2ff   : > { %v623_v5 = vpop.xlane.xlu0 %622 }
 0x300   : > { %v624_v6 = vsub.f32 %v619_v36, %v623_v5 }
 0x302   : > { %v625_v7 = vmul.f32 1.442695, %v624_v6 }
 0x304   : > { %2552 = vpow2.f32 %v625_v7 }
 0x30b   : > { %1137 = vrot.lane.b32.xlu1 %v3188_v16, %s2859_s10  ;;  %s2042_s10 = sshll.u32 %s3285_s11, 4  ;;  %s3353_s10 = int_to_ptr.vmem [resolvable:$true] %s2042_s10 }
 0x30e   : > { %v2553_v8 = vpop.eup %2552 }
 0x30f   : > { %v627_v9 = vsel %vm620_vm3, %v2553_v8, 0.0 }
 0x314   : > { %969 = vrot.lane.b32.xlu0 %v3188_v16, %s2860_s17 }
 0x32f   : > { %628 = vadd.xlane.f32.xlu1 %v627_v9 }
 0x373   : > { %v790_v11 = vpop.xlane.xlu1 %789 }
 0x374   : > { %v791_v12 = vsub.f32 %v787_v40, %v790_v11 }
 0x376   : > { %v792_v13 = vmul.f32 1.442695, %v791_v12 }
 0x377   : > { %v958_v14 = vpop.xlane.xlu0 %957 }
 0x378   : > { %2554 = vpow2.f32 %v792_v13  ;;  %v959_v15 = vsub.f32 %v955_v44, %v958_v14 }
 0x37a   : > { %v960_v17 = vmul.f32 1.442695, %v959_v15 }
 0x37b   : > { %v1126_v18 = vpop.xlane.xlu0 %1125 }
 0x37c   : > { %2556 = vpow2.f32 %v960_v17  ;;  %v1127_v19 = vsub.f32 %v1123_v48, %v1126_v18 }
 0x37e   : > { %v1128_v20 = vmul.f32 1.442695, %v1127_v19 }
 0x37f   : > { %v1294_v27 = vpop.xlane.xlu1 %1293 }
 0x380   : > { %2558 = vpow2.f32 %v1128_v20  ;;  %v1295_v28 = vsub.f32 %v1291_v52, %v1294_v27 }
 0x382   : > { %v3254_v21 = vpop.eup %2554  ;;  %v1296_v32 = vmul.f32 1.442695, %v1295_v28 }
 0x383   : > { %v794_v22 = vsel %vm620_vm3, %v3254_v21, 0.0  ;;  %v1462_v29 = vpop.xlane.xlu0 %1461 }
 0x384   : > { %795 = vadd.xlane.f32.xlu0 %v794_v22  ;;  %v1463_v31 = vsub.f32 %v1459_v56, %v1462_v29  ;;  %2560 = vpow2.f32 %v1296_v32 }
 0x386   : > { %v3258_v23 = vpop.eup %2556  ;;  %v1464_v35 = vmul.f32 1.442695, %v1463_v31 }
 0x387   : > { %v962_v24 = vsel %vm620_vm3, %v3258_v23, 0.0  ;;  %v1630_v30 = vpop.xlane.xlu1 %1629 }
 0x388   : > { %963 = vadd.xlane.f32.xlu1 %v962_v24  ;;  %v1631_v33 = vsub.f32 %v1627_v60, %v1630_v30  ;;  %2562 = vpow2.f32 %v1464_v35  ;;  %v1926_v24 = vld [vmem:[#allocation10 + $0x8] sm:$0xff] }
 0x38a   : > { %v3262_v25 = vpop.eup %2558  ;;  %v1632_v36 = vmul.f32 1.442695, %v1631_v33 }
 0x38b   : > { %v1130_v26 = vsel %vm620_vm3, %v3262_v25, 0.0  ;;  %v1798_v34 = vpop.xlane.xlu0 %1797  ;;  %v1138_v39 = vpop.permute.xlu1 %1137 }
 0x38c   : > { %1131 = vadd.xlane.f32.xlu0 %v1130_v26  ;;  %v1799_v37 = vsub.f32 %v1795_v2, %v1798_v34  ;;  %2564 = vpow2.f32 %v1632_v36  ;;  %v1928_v26 = vld [vmem:[#allocation10 + $0x18] sm:$0xff] }
 0x38e   : > { %v1800_v38 = vmul.f32 1.442695, %v1799_v37  ;;  %v3268_v40 = vpop.eup %2560 }
 0x38f   : > { %v1298_v43 = vsel %vm620_vm3, %v3268_v40, 0.0  ;;  %v970_v51 = vpop.permute.xlu0 %969 }
 0x390   : > { %2566 = vpow2.f32 %v1800_v38 }
 0x392   : > { %v3270_v41 = vpop.eup %2562 }
 0x393   : > { %v1466_v46 = vsel %vm620_vm3, %v3270_v41, 0.0 }
 0x396   : > { %v3274_v44 = vpop.eup %2564 }
 0x397   : > { %v1634_v45 = vsel %vm620_vm3, %v3274_v44, 0.0 }
 0x399   : > { %1473 = vrot.lane.b32.xlu1 %v3188_v16, %s2861_s15 }
 0x39a   : > { %v3280_v47 = vpop.eup %2566 }
 0x39b   : > { %v1802_v48 = vsel %vm620_vm3, %v3280_v47, 0.0 }
 0x3a2   : > { %1305 = vrot.lane.b32.xlu0 %v3188_v16, %s2862_s29  ;;  %s3351_s29 = scalar_lea.hbm %s3440_s7, %s2258_s23 }
 0x3bc   : > { %v629_v42 = vpop.xlane.xlu1 %628 }
 0x3bd   : > { %2568 = vrcp.f32 %v629_v42  ;;  %1299 = vadd.xlane.f32.xlu1 %v1298_v43 }
 0x3c1   : > { %1635 = vadd.xlane.f32.xlu1 %v1634_v45  ;;  %1467 = vadd.xlane.f32.xlu0 %v1466_v46 }
 0x3c5   : > { %1803 = vadd.xlane.f32.xlu1 %v1802_v48 }
 0x3c7   : > { %v2569_v49 = vpop.eup %2568 }
 0x3c8   : > { %v631_v50 = vmul.f32 %v2569_v49, %v2553_v8 }
 0x3ca   : > { %632 = vst.msk [vmem:[%s3285_s11] sm:$0xff] %vm620_vm3, %v631_v50  ;;  %2336 = vmatmul.mubr.msk.f32.vlgmr.msra.gmra.mrb[4].mxu1 %vm620_vm3, %v631_v50 }
 0x3cb   : > { %2344 = vmatpush3.msra.mxu1 %v3252_v10  ;;  %2345 = vmatprep.mubr.msk.f32.mxu1 %vm2848_vm0, %v2849_v1 }
 0x3cc   : > { %2353 = vmatprep.subr.mxu1 %v2849_v1 }
 0x3d6   : > { %1809 = vrot.lane.b32.xlu1 %v3188_v16, %s2863_s12  ;;  %s2728_s12 = scalar_lea.vmem %s3353_s10, 1024 }
 0x3d7   : > { %1641 = vrot.lane.b32.xlu0 %v3188_v16, %s2864_s30  ;;  %p2729_p12 = scmp.ne.s32.totalorder %s3353_s10, %s2728_s12  ;;  %s2872_s30 = smov [#allocation12]  }
 0x3d9   : > { %p2730_p2 = pnand %p2729_p12, %p3467_p1 }
 0x3db   : > { %p2731_p4 = pneg %p2730_p2 }
 0x411   : > { %v796_v52 = vpop.xlane.xlu0 %795 }
 0x412   : > { %2570 = vrcp.f32 %v796_v52 }
 0x415   : > { %v964_v53 = vpop.xlane.xlu1 %963 }
 0x416   : > { %2572 = vrcp.f32 %v964_v53 }
 0x419   : > { %v1132_v54 = vpop.xlane.xlu0 %1131  ;;  %v1474_v61 = vpop.permute.xlu1 %1473 }
 0x41a   : > { %2574 = vrcp.f32 %v1132_v54 }
 0x41c   : > { %v2571_v55 = vpop.eup %2570 }
 0x41d   : > { %v798_v56 = vmul.f32 %v2571_v55, %v3254_v21  ;;  %v1306_v60 = vpop.permute.xlu0 %1305 }
 0x41f   : > { %2223 = vst.msk [vmem:[%s3285_s11 + $0x8] sm:$0xff] %vm620_vm3, %v798_v56  ;;  %2346 = vmatmul.mubr.msk.f32.vlgmr.msra.gmra.mrb[6].mxu1 %vm620_vm3, %v798_v56 }
 0x420   : > { %v2573_v57 = vpop.eup %2572  ;;  %2354 = vmatpush3.msra.mxu1 %v970_v51  ;;  %2355 = vmatprep.mubr.msk.f32.mxu1 %vm2848_vm0, %v2849_v1 }
 0x421   : > { %v966_v16 = vmul.f32 %v2573_v57, %v3258_v23  ;;  %2363 = vmatprep.subr.mxu1 %v2849_v1  ;;  %v1925_v23 = vld [vmem:[#allocation10] sm:$0xff] }
 0x423   : > { %2227 = vst.msk [vmem:[%s3285_s11 + $0x10] sm:$0xff] %vm620_vm3, %v966_v16  ;;  %2356 = vmatmul.mubr.msk.f32.vlgmr.msra.gmra.mrb[8].mxu1 %vm620_vm3, %v966_v16 }
 0x424   : > { %v2575_v58 = vpop.eup %2574  ;;  %2364 = vmatpush3.msra.mxu1 %v1138_v39  ;;  %2365 = vmatprep.mubr.msk.f32.mxu1 %vm2848_vm0, %v2849_v1 }
 0x425   : > { %v1134_v59 = vmul.f32 %v2575_v58, %v3262_v25  ;;  %2373 = vmatprep.subr.mxu1 %v2849_v1  ;;  %v1927_v25 = vld [vmem:[#allocation10 + $0x10] sm:$0xff] }
 0x426   : > { %v2435_v27 = vpack.c.bf16 %v1928_v26, %v1927_v25 }
 0x427   : > { %2231 = vst.msk [vmem:[%s3285_s11 + $0x18] sm:$0xff] %vm620_vm3, %v1134_v59  ;;  %2366 = vmatmul.mubr.msk.f32.vlgmr.msra.gmra.mrb[10].mxu1 %vm620_vm3, %v1134_v59 }
 0x428   : > { %2374 = vmatpush3.msra.mxu1 %v1306_v60  ;;  %2375 = vmatprep.mubr.msk.f32.mxu1 %vm2848_vm0, %v2849_v1 }
 0x429   : > { %2383 = vmatprep.subr.mxu1 %v2849_v1 }
 0x44a   : > { %v1300_v62 = vpop.xlane.xlu1 %1299 }
 0x44b   : > { %2576 = vrcp.f32 %v1300_v62 }
 0x44e   : > { %v1636_v63 = vpop.xlane.xlu1 %1635  ;;  %v1468_v2 = vpop.xlane.xlu0 %1467 }
 0x44f   : > { %2578 = vrcp.f32 %v1636_v63 }
 0x450   : > { %2580 = vrcp.f32 %v1468_v2 }
 0x452   : > { %v1804_v3 = vpop.xlane.xlu1 %1803  ;;  %v1642_v11 = vpop.permute.xlu0 %1641 }
 0x453   : > { %2582 = vrcp.f32 %v1804_v3 }
 0x455   : > { %v2577_v4 = vpop.eup %2576 }
 0x456   : > { %v1302_v5 = vmul.f32 %v2577_v4, %v3268_v40  ;;  %v1810_v13 = vpop.permute.xlu1 %1809 }
 0x458   : > { %2235 = vst.msk [vmem:[%s3285_s11 + $0x20] sm:$0xff] %vm620_vm3, %v1302_v5  ;;  %2376 = vmatmul.mubr.msk.f32.vlgmr.msra.gmra.mrb[12].mxu1 %vm620_vm3, %v1302_v5 }
 0x459   : > { %v2579_v6 = vpop.eup %2578  ;;  %2384 = vmatpush3.msra.mxu1 %v1474_v61  ;;  %2385 = vmatprep.mubr.msk.f32.mxu1 %vm2848_vm0, %v2849_v1 }
 0x45a   : > { %v2581_v7 = vpop.eup %2580  ;;  %v1638_v8 = vmul.f32 %v2579_v6, %v3274_v44  ;;  %2393 = vmatprep.subr.mxu1 %v2849_v1 }
 0x45b   : > { %v1470_v9 = vmul.f32 %v2581_v7, %v3270_v41 }
 0x45c   : > { %2243 = vst.msk [vmem:[%s3285_s11 + $0x30] sm:$0xff] %vm620_vm3, %v1638_v8 }
 0x45d   : > { %v2583_v10 = vpop.eup %2582  ;;  %2239 = vst.msk [vmem:[%s3285_s11 + $0x28] sm:$0xff] %vm620_vm3, %v1470_v9  ;;  %2386 = vmatmul.mubr.msk.f32.vlgmr.msra.gmra.mrb[14].mxu1 %vm620_vm3, %v1470_v9 }
 0x45e   : > { %v1806_v12 = vmul.f32 %v2583_v10, %v3280_v47  ;;  %2394 = vmatpush3.msra.mxu1 %v1642_v11  ;;  %2395 = vmatprep.mubr.msk.f32.mxu1 %vm2848_vm0, %v2849_v1 }
 0x45f   : > { %2403 = vmatprep.subr.mxu1 %v2849_v1 }
 0x460   : > { %2247 = vst.msk [vmem:[%s3285_s11 + $0x38] sm:$0xff] %vm620_vm3, %v1806_v12 }
 0x461   : > { %2396 = vmatmul.mubr.msk.f32.vlgmr.msra.gmra.mrb[16].mxu1 %vm620_vm3, %v1638_v8 }
 0x462   : > { %2404 = vmatpush3.msra.mxu1 %v1810_v13  ;;  %2405 = vmatprep.mubr.msk.f32.mxu1 %vm2848_vm0, %v2849_v1  ;;  %v2432_v1 = vpack.c.bf16 %v1926_v24, %v1925_v23 }
 0x464   : > { %2433 = vmatpush3.bf16.msra.mxu0 %v2432_v1 }
 0x465   : > { %2406 = vmatmul.mubr.msk.f32.vlgmr.msra.gmra.mrb[18].mxu1 %vm620_vm3, %v1806_v12  ;;  %2434 = vmatprep.subr.bf16.mxu0 %v2847_v0 }
 0x468   : > { %2436 = vmatpush3.bf16.msra.mxu0 %v2435_v27 }
 0x49d   : > { %v705_v14 = vpop.f32.mrb[4].mxu1 }
 0x49e   : > { %v2337_v15 = vpop.f32.mrb[5].mxu1 }
 0x4f2   : > { %v873_v17 = vpop.f32.mrb[6].mxu1 }
 0x4f3   : > { %1886 = vrot.lane.b32.xlu0 %v873_v17, %s2865_s8  ;;  %v2347_v18 = vpop.f32.mrb[7].mxu1  ;;  %s2732_s8 = sshll.u32 %s2872_s30, 4  ;;  %s2733_s8 = int_to_ptr.vmem [resolvable:$false] %s2732_s8 }
 0x4f4   : > { %s2734_s11 = scalar_lea.vmem %s2733_s8, 2048  ;;  %p2735_p0 = scmp.lt.s32.totalorder %s3353_s10, %s2733_s8 }
 0x4f5   : > { %p2736_p8 = scmp.lt.s32.totalorder %s2734_s11, %s2728_s12 }
 0x4f6   : > { %v1041_v19 = vpop.f32.mrb[8].mxu1 }
 0x4f7   : > { %1890 = vrot.lane.b32.xlu1 %v1041_v19, %s2866_s13  ;;  %v2357_v20 = vpop.f32.mrb[9].mxu1  ;;  %p2737_p6 = por %p2736_p8, %p2735_p0 }
 0x4f9   : > { %p2738_p10 = pnand %p2737_p6, %p2731_p4 }
 0x4fa   : > { %v1209_v21 = vpop.f32.mrb[10].mxu1 }
 0x4fb   : > { %1894 = vrot.lane.b32.xlu0 %v1209_v21, %s2867_s20  ;;  %v2367_v22 = vpop.f32.mrb[11].mxu1 }
 0x52b   : > { %v1377_v28 = vpop.f32.mrb[12].mxu1 }
 0x52c   : > { %1898 = vrot.lane.b32.xlu1 %v1377_v28, %s2868_s21  ;;  %v2377_v29 = vpop.f32.mrb[13].mxu1 }
 0x530   : > { %v1545_v30 = vpop.f32.mrb[14].mxu1 }
 0x531   : > { %1902 = vrot.lane.b32.xlu0 %v1545_v30, %s2869_s14  ;;  %v2387_v31 = vpop.f32.mrb[15].mxu1 }
 0x534   : > { %v1713_v32 = vpop.f32.mrb[16].mxu1 }
 0x535   : > { %1906 = vrot.lane.b32.xlu1 %v1713_v32, %s2870_s3  ;;  %v2397_v33 = vpop.f32.mrb[17].mxu1 }
 0x538   : > { %v1881_v34 = vpop.f32.mrb[18].mxu1 }
 0x539   : > { %1910 = vrot.lane.b32.xlu0 %v1881_v34, %s2871_s16  ;;  %v2407_v0 = vpop.f32.mrb[19].mxu1 }
 0x565   : > { %v1887_v35 = vpop.permute.xlu0 %1886 }
 0x566   : > { %v1913_v39 = vsel %vm542_vm2, %v705_v14, %v1887_v35 }
 0x569   : > { %v1891_v36 = vpop.permute.xlu1 %1890 }
 0x56a   : > { %v1914_v40 = vsel %vm620_vm3, %v1913_v39, %v1891_v36 }
 0x56d   : > { %v1895_v37 = vpop.permute.xlu0 %1894 }
 0x56e   : > { %v1916_v42 = vsel %vm1915_vm4, %v1914_v40, %v1895_v37 }
 0x59e   : > { %v1899_v38 = vpop.permute.xlu1 %1898 }
 0x59f   : > { %v1918_v44 = vsel %vm1917_vm5, %v1916_v42, %v1899_v38 }
 0x5a3   : > { %v1903_v41 = vpop.permute.xlu0 %1902 }
 0x5a4   : > { %v1920_v45 = vsel %vm1919_vm6, %v1918_v44, %v1903_v41 }
 0x5a7   : > { %v1907_v43 = vpop.permute.xlu1 %1906 }
 0x5a8   : > { %v1922_v46 = vsel %vm1921_vm7, %v1920_v45, %v1907_v43 }
 0x5ab   : > { %v1911_v47 = vpop.permute.xlu0 %1910 }
 0x5ac   : > { %v1924_v48 = vsel %vm1923_vm8, %v1922_v46, %v1911_v47 }
 0x5ad   : > { %2417 = vmatmul.mubr.msk.f32.vlgmr.msra.gmra.mrb[16].mxu0 %vm390_vm1, %v1924_v48 }
 0x5ae   : > { %2741 = shalt.err (!%p2738_p10)
}
 0x5af   : > { %s2742_s20 = scalar_lea.hbm %s3351_s29, 1024  ;;  %s2746_s3 = scalar_lea.hbm %s3440_s7, 2048 }
 0x5b0   : > { %p2743_p13 = scmp.ne.s32.totalorder %s3351_s29, %s2742_s20  ;;  %p2747_p9 = scmp.lt.u32.totalorder %s3351_s29, %s3440_s7 }
 0x5b1   : > { %p2748_p3 = scmp.lt.u32.totalorder %s2746_s3, %s2742_s20  ;;  %p2750_p12 = scmp.lt.u32.totalorder %s2742_s20, %s3351_s29 }
 0x5b2   : > { %p2744_p5 = pnand %p2743_p13, %p3467_p1 }
 0x5b3   : > { %p2749_p7 = por %p2748_p3, %p2747_p9 }
 0x5b4   : > { %p2745_p11 = pneg %p2744_p5 }
 0x5b5   : > { %p2751_p2 = por %p2750_p12, %p2749_p7 }
 0x5b7   : > { %p2752_p4 = pnand %p2751_p2, %p2745_p11 }
 0x5b9   : > { %2755 = shalt.err (!%p2752_p4)
}
 0x5ba   : > { %s2873_s17 = smov 128   ;;  %v2249_v49 = vld [vmem:[%s3438_s5] ss:$0 sm:$0xff]  ;;  %s2253_s30 = sshll.u32 %s2936_s28, 7 }
 0x5bb   : > { %2454 = dma.vmem_to_hbm [thread:$0]  (%p3467_p1), %s3353_s10, 1024, %s3351_s29, %s2016_s9, %s2873_s17, %s2873_s17, %s2866_s13  }
 0x5bc   : > { %s377_s8 = scalar_lea.vmem [#allocation11], %s3146_s4  ;;  %s3388_s14 = scalar_lea.hbm %s3439_s6, %s2253_s30 }
 0x5bd   : > { %s2029_s11 = sshll.u32 %s377_s8, 4  ;;  %s2011_s13 = scalar_lea.sflag [#allocation4], %s3143_s2  ;;  %s3390_s11 = int_to_ptr.vmem [resolvable:$true] %s2029_s11 }
 0x5be   : > { %s2756_s10 = scalar_lea.vmem %s3390_s11, 128  ;;  %s2874_s28 = smov [#allocation11]  }
 0x5bf   : > { %p2757_p0 = scmp.ne.s32.totalorder %s3390_s11, %s2756_s10  ;;  %s2760_s4 = sshll.u32 %s2874_s28, 4  ;;  %s2761_s4 = int_to_ptr.vmem [resolvable:$false] %s2760_s4 }
 0x5c0   : > { %s2762_s29 = scalar_lea.vmem %s2761_s4, 256  ;;  %p2763_p10 = scmp.lt.s32.totalorder %s3390_s11, %s2761_s4 }
 0x5c1   : > { %p2758_p8 = pnand %p2757_p0, %p3467_p1  ;;  %p2764_p13 = scmp.lt.s32.totalorder %s2762_s29, %s2756_s10 }
 0x5c3   : > { %p2759_p6 = pneg %p2758_p8  ;;  %p2765_p5 = por %p2764_p13, %p2763_p10 }
 0x5c5   : > { %p2766_p11 = pnand %p2765_p5, %p2759_p6 }
 0x680   : > { %v2005_v50 = vpop.f32.mrb[16].mxu0 }
 0x681   : > { %v2006_v51 = vadd.f32 %v2249_v49, %v2005_v50  ;;  %v2418_v52 = vpop.f32.mrb[17].mxu0 }
 0x683   : > { %2009 = vst.msk [vmem:[%s377_s8] sm:$0xff] %vm390_vm1, %v2006_v51 }
 0x684   : > { %2769 = shalt.err (!%p2766_p11)
}
 0x685   : > { %s2770_s2 = scalar_lea.hbm %s3388_s14, 128  ;;  %s2774_s16 = scalar_lea.hbm %s3439_s6, 256 }
 0x686   : > { %p2771_p9 = scmp.ne.s32.totalorder %s3388_s14, %s2770_s2  ;;  %p2775_p12 = scmp.lt.u32.totalorder %s3388_s14, %s3439_s6 }
 0x687   : > { %p2776_p2 = scmp.lt.u32.totalorder %s2774_s16, %s2770_s2  ;;  %p2778_p0 = scmp.lt.u32.totalorder %s2770_s2, %s3388_s14 }
 0x688   : > { %p2772_p3 = pnand %p2771_p9, %p3467_p1 }
 0x689   : > { %p2777_p4 = por %p2776_p2, %p2775_p12 }
 0x68a   : > { %p2773_p7 = pneg %p2772_p3 }
 0x68b   : > { %p2779_p8 = por %p2778_p0, %p2777_p4 }
 0x68d   : > { %p2780_p6 = pnand %p2779_p8, %p2773_p7 }
 0x68f   : > { %2783 = shalt.err (!%p2780_p6)
}
 0x690   : > { %2453 = dma.vmem_to_hbm [thread:$0]  (%p3467_p1), %s3390_s11, 128, %s3388_s14, %s2011_s13  }
 0x691 PF: > { %s3468_s15 = sld [smem:[#allocation20_spill]]  ;;  %s2057_s12 = sand.u32 1, %s2826_s24  }
 0x692   : > { %p3470_p13 = scmp.ge.s32.totalorder %s2838_s27, 2  ;;  %s2058_s30 = scalar_lea.sflag [#allocation4], %s2057_s12 }
 0x697   : > { %p3469_p10 = scmp.ne.s32.totalorder %s3468_s15, 0 }
 0x699   : > { %p2475_p5 = pnand %p3470_p13, %p3469_p10 }
 0x69b   : > { %2817 = dma.done.wait (!%p2475_p5), %s2058_s30, 128  }
 0x69c   : > { %2819 = vsyncadd (!%p2475_p5), %s2058_s30, 4294967168  ;;  %s2067_s8 = scalar_lea.sflag [#allocation13], %s2057_s12 }
 0x69d   : > { %2821 = dma.done.wait (!%p2475_p5), %s2067_s8, 1024  }
 0x69e   : > { %2823 = vsyncadd (!%p2475_p5), %s2067_s8, 4294966272  ;;  %p28_p1 = scmp.ge.s32.totalorder %s3055_s22, 4   ;;  %s3471_s24 = smov %s2830_s25 }
 0x69f   : > { %s3472_s25 = smov %s2834_s26  ;;  %s3473_s26 = smov %s3065_s18 }
 0x6a0   : > { %s3474_s27 = smov %s3055_s22  ;;  %30 = sbr.rel (!%p28_p1) target bundleno = 14 (0xe), region = 138 }
 0x6a7   :  { %2072 = vsyncpa [#allocation3], 1 }
 0x6a8   :  { %2074 = vsyncpa [#allocation3 + $0x1], 1 }
 0x6a9   :  { %2075 = vsyncpa [#allocation6], 1 }
 0x6aa   :  { %2077 = vsyncpa [#allocation6 + $0x1], 1 }
 0x6ab   :  { %2078 = vsyncpa [#allocation9], 1 }
 0x6ac   :  { %2079 = vsyncpa [#allocation4], 1 }
 0x6ad   :  { %2081 = vsyncpa [#allocation4 + $0x1], 1 }
 0x6ae   :  { %2082 = vsyncpa [#allocation13], 1 }
 0x6af   :  { %2084 = vsyncpa [#allocation13 + $0x1], 1 }

</bundles_post_ra>
